<compile_context>
chip_gen: v7x
topology: tpu7x:2x2x1
jax: 0.10.0
libtpu: 0.0.40
codegen_flags: <defaults>
</compile_context>

<pallas_src>
import functools

import numpy as np
import jax
import jax.numpy as jnp
from jax.experimental import pallas as pl
from jax.experimental.pallas import tpu as pltpu


def _mix32(x):
    """32-bit avalanche mixer (lowbias32-style), uint32 arithmetic."""
    x = jnp.bitwise_xor(x, jnp.right_shift(x, 16))
    x = x * jnp.uint32(0x7FEB352D)
    x = jnp.bitwise_xor(x, jnp.right_shift(x, 15))
    x = x * jnp.uint32(0x846CA68B)
    x = jnp.bitwise_xor(x, jnp.right_shift(x, 16))
    return x


def _operation_fi(h, lin_u32, seed_u32, call_idx, *, ber, bit):
    """Per-row symmetric quantize -> random bit flips -> dequantize."""
    qmax = (1 << (bit - 1)) - 1
    qmin = -(1 << (bit - 1))
    code_mask = (1 << bit) - 1

    absmax = jnp.maximum(jnp.max(jnp.abs(h), axis=-1, keepdims=True), 1e-8)
    delta = absmax * (1.0 / qmax)          # dequant step, shape (rows, 1)
    inv_delta = qmax / absmax              # per-row reciprocal (cheap column op)

    q = jnp.clip(jnp.round(h * inv_delta), qmin, qmax).astype(jnp.int32)
    q = jnp.bitwise_and(q, code_mask)      # two's-complement low `bit` bits

    # Bernoulli(ber) per bit-plane via byte thresholding: each 32-bit hash word
    # yields 4 independent 8-bit fields -> ceil(bit/4) draws per element
    # instead of `bit`.  ber is quantized to multiples of 1/256.
    thresh8 = min(256, int(round(float(ber) * 256.0)))
    if thresh8 > 0:
        n_words = (bit + 3) // 4
        for w in range(n_words):
            ctr = jnp.uint32(call_idx * n_words + w + 1)
            r = _mix32(
                jnp.bitwise_xor(
                    jnp.bitwise_xor(lin_u32, seed_u32 * jnp.uint32(0x9E3779B9)),
                    ctr * jnp.uint32(0x85EBCA6B)))
            for j in range(min(4, bit - 4 * w)):
                b = 4 * w + j
                byte = jnp.bitwise_and(jnp.right_shift(r, 8 * j), jnp.uint32(0xFF))
                # Fold the flip directly into the code word (no flip accumulator).
                q = jnp.bitwise_xor(
                    q, jnp.where(byte < thresh8, jnp.int32(1 << b), jnp.int32(0)))

    # Sign-extend the `bit`-bit code back to int32 and dequantize.
    sh = 32 - bit
    q = jnp.right_shift(jnp.left_shift(q, sh), sh)
    return q.astype(jnp.float32) * delta


def layernorm_fi_kernel(seed_ref, x_ref, w_ref, b_ref, o_ref, *,
                        ber, bit, eps, feat, tile_r):
    x = x_ref[...]                                   # (tile_r, feat) f32
    w = w_ref[...]                                   # (1, feat)
    b = b_ref[...]                                   # (1, feat)
    seed_u32 = seed_ref[0].astype(jnp.uint32)

    # Global element linear index so faults stay i.i.d. across grid tiles.
    row0 = pl.program_id(0) * tile_r
    rows = row0 + jax.lax.broadcasted_iota(jnp.int32, x.shape, 0)
    cols = jax.lax.broadcasted_iota(jnp.int32, x.shape, 1)
    lin_u32 = (rows * feat + cols).astype(jnp.uint32)

    mean = jnp.mean(x, axis=-1, keepdims=True)
    xc = x - mean
    # torch.std default is unbiased (divide by N-1).
    var = jnp.sum(xc * xc, axis=-1, keepdims=True) * (1.0 / max(feat - 1, 1))
    inv_std = 1.0 / (jnp.sqrt(var) + eps)            # per-row; multiply below

    h = _operation_fi(xc, lin_u32, seed_u32, 0, ber=ber, bit=bit)
    h = w * h
    h = _operation_fi(h, lin_u32, seed_u32, 1, ber=ber, bit=bit)
    h = h * inv_std
    h = _operation_fi(h, lin_u32, seed_u32, 2, ber=ber, bit=bit)
    h = h + b
    h = _operation_fi(h, lin_u32, seed_u32, 3, ber=ber, bit=bit)

    o_ref[...] = h.astype(o_ref.dtype)


def layernorm_fi_forward(x, weight, bias, *, ber, bit, epsilon=1e-6, seed=0):
    """x: (..., features). weight/bias: (features,). Returns same shape as x."""
    orig_shape = x.shape
    feat = int(orig_shape[-1])
    rows = int(np.prod(orig_shape[:-1])) if len(orig_shape) > 1 else 1
    x2 = x.reshape(rows, feat).astype(jnp.float32)
    w2 = weight.reshape(1, feat).astype(jnp.float32)
    b2 = bias.reshape(1, feat).astype(jnp.float32)

    # Row tile: multiple of 8 (sublane), feature dim kept whole per block (the
    # row reduction needs it).  Tile ~<= 2 MiB f32 so double-buffered input +
    # output (4 live buffers) fits comfortably inside v7x's scoped VMEM while
    # staying large enough to hit the HBM-roofline sweet spot on v5e/v6e.
    target_tile_bytes = 2 * 1024 * 1024
    tile_r = max(8, min(512, target_tile_bytes // max(feat * 4, 1)))
    tile_r = max(8, (tile_r // 8) * 8)
    if rows <= tile_r:
        tile_r = ((rows + 7) // 8) * 8
    rows_pad = ((rows + tile_r - 1) // tile_r) * tile_r
    if rows_pad != rows:
        x2 = jnp.pad(x2, ((0, rows_pad - rows), (0, 0)))

    seed_arr = jnp.array([seed], dtype=jnp.int32)
    kernel = functools.partial(
        layernorm_fi_kernel, ber=float(ber), bit=int(bit),
        eps=float(epsilon), feat=feat, tile_r=tile_r)

    out2 = pl.pallas_call(
        kernel,
        out_shape=jax.ShapeDtypeStruct((rows_pad, feat), jnp.float32),
        grid=(rows_pad // tile_r,),
        in_specs=[
            pl.BlockSpec(memory_space=pltpu.MemorySpace.SMEM),     # seed scalar
            pl.BlockSpec((tile_r, feat), lambda i: (i, 0)),        # x tile
            pl.BlockSpec((1, feat), lambda i: (0, 0)),             # weight
            pl.BlockSpec((1, feat), lambda i: (0, 0)),             # bias
        ],
        out_specs=pl.BlockSpec((tile_r, feat), lambda i: (i, 0)),
        compiler_params=pltpu.CompilerParams(
            dimension_semantics=("parallel",)),                    # v7x: 2 TCs
    )(seed_arr, x2, w2, b2)

    return out2[:rows].reshape(orig_shape)


if __name__ == "__main__":
    key = jax.random.PRNGKey(0)
    batch, seq, hidden = 2, 8, 32
    x = jax.random.normal(key, (batch, seq, hidden), dtype=jnp.float32)

    # Parameters as initialized in LayerNorm_fi.__init__.
    weight = jnp.ones((hidden,), dtype=jnp.float32)
    bias = jnp.zeros((hidden,), dtype=jnp.float32)

    ber, bit, eps = 0.01, 8, 1e-6

    y = layernorm_fi_forward(x, weight, bias, ber=ber, bit=bit,
                             epsilon=eps, seed=0)
    y = jax.block_until_ready(y)
    assert y.shape == x.shape
    assert bool(jnp.all(jnp.isfinite(y)))

    # Sanity: with ber=0 the fault op reduces to 8-bit quantize/dequantize, so
    # the result must closely track the exact unbiased-std LayerNorm.
    y0 = layernorm_fi_forward(x, weight, bias, ber=0.0, bit=bit,
                              epsilon=eps, seed=0)
    y0 = jax.block_until_ready(y0)
    mean = jnp.mean(x, axis=-1, keepdims=True)
    std = jnp.std(x, axis=-1, keepdims=True, ddof=1)
    ref = weight * (x - mean) / (std + eps) + bias
    assert float(jnp.max(jnp.abs(y0 - ref))) < 0.2

    print("KERNEL_OK")
</pallas_src>

<mosaic_0001>
module attributes {stable_mosaic.version = 11 : i64} {
  func.func @layernorm_fi_kernel(%arg0: i32, %arg1: memref<1xi32, #tpu.memory_space<smem>>, %arg2: memref<16x32xf32, #tpu.memory_space<vmem>>, %arg3: memref<1x32xf32, #tpu.memory_space<vmem>>, %arg4: memref<1x32xf32, #tpu.memory_space<vmem>>, %arg5: memref<16x32xf32, #tpu.memory_space<vmem>>) attributes {dimension_semantics = [#tpu.dimension_semantics<parallel>], iteration_bounds = array<i64: 1>, scalar_prefetch = 0 : i64, scratch_operands = 0 : i64, tpu.core_type = #tpu.core_type<tc>, window_params = [{transform_indices = @transform_0, window_bounds = array<i64: 1>}, {transform_indices = @transform_1, window_bounds = array<i64: 16, 32>}, {pipeline_mode = #tpu.pipeline_mode<synchronous>, transform_indices = @transform_2, window_bounds = array<i64: 1, 32>}, {pipeline_mode = #tpu.pipeline_mode<synchronous>, transform_indices = @transform_3, window_bounds = array<i64: 1, 32>}, {transform_indices = @transform_4, window_bounds = array<i64: 16, 32>}]} {
    %c0 = arith.constant 0 : index
    %c0_0 = arith.constant 0 : index
    %0 = vector.load %arg2[%c0, %c0_0] : memref<16x32xf32, #tpu.memory_space<vmem>>, vector<16x32xf32>
    %c0_1 = arith.constant 0 : index
    %c0_2 = arith.constant 0 : index
    %1 = vector.load %arg3[%c0_1, %c0_2] : memref<1x32xf32, #tpu.memory_space<vmem>>, vector<1x32xf32>
    %c0_3 = arith.constant 0 : index
    %c0_4 = arith.constant 0 : index
    %2 = vector.load %arg4[%c0_3, %c0_4] : memref<1x32xf32, #tpu.memory_space<vmem>>, vector<1x32xf32>
    %c0_5 = arith.constant 0 : index
    %3 = memref.load %arg1[%c0_5] : memref<1xi32, #tpu.memory_space<smem>>
    %c16_i32 = arith.constant 16 : i32
    %4 = arith.muli %arg0, %c16_i32 : i32
    %5 = tpu.iota {dimensions = array<i32: 0>} : vector<16x32xi32>
    %6 = vector.broadcast %4 : i32 to vector<16x32xi32>
    %7 = arith.addi %6, %5 : vector<16x32xi32>
    %8 = tpu.iota {dimensions = array<i32: 1>} : vector<16x32xi32>
    %c32_i32 = arith.constant 32 : i32
    %9 = vector.broadcast %c32_i32 : i32 to vector<16x32xi32>
    %10 = arith.muli %7, %9 : vector<16x32xi32>
    %11 = arith.addi %10, %8 : vector<16x32xi32>
    %cst = arith.constant dense<0.000000e+00> : vector<16xf32>
    %12 = vector.multi_reduction <add>, %0, %cst [1] : vector<16x32xf32> to vector<16xf32>
    %13 = vector.shape_cast %12 : vector<16xf32> to vector<16x1xf32>
    %cst_6 = arith.constant 3.200000e+01 : f32
    %14 = vector.broadcast %cst_6 : f32 to vector<16x1xf32>
    %15 = arith.divf %13, %14 : vector<16x1xf32>
    %16 = vector.broadcast %15 : vector<16x1xf32> to vector<16x32xf32>
    %17 = arith.subf %0, %16 : vector<16x32xf32>
    %18 = arith.mulf %17, %17 : vector<16x32xf32>
    %cst_7 = arith.constant dense<0.000000e+00> : vector<16xf32>
    %19 = vector.multi_reduction <add>, %18, %cst_7 [1] : vector<16x32xf32> to vector<16xf32>
    %20 = vector.shape_cast %19 : vector<16xf32> to vector<16x1xf32>
    %cst_8 = arith.constant 0.0322580636 : f32
    %21 = vector.broadcast %cst_8 : f32 to vector<16x1xf32>
    %22 = arith.mulf %20, %21 : vector<16x1xf32>
    %23 = math.sqrt %22 : vector<16x1xf32>
    %cst_9 = arith.constant 9.99999997E-7 : f32
    %24 = vector.broadcast %cst_9 : f32 to vector<16x1xf32>
    %25 = arith.addf %23, %24 : vector<16x1xf32>
    %cst_10 = arith.constant 1.000000e+00 : f32
    %26 = vector.broadcast %cst_10 : f32 to vector<16x1xf32>
    %27 = arith.divf %26, %25 : vector<16x1xf32>
    %28 = math.absf %17 : vector<16x32xf32>
    %cst_11 = arith.constant dense<0xFF800000> : vector<16xf32>
    %29 = vector.multi_reduction <maximumf>, %28, %cst_11 [1] : vector<16x32xf32> to vector<16xf32>
    %30 = vector.shape_cast %29 : vector<16xf32> to vector<16x1xf32>
    %cst_12 = arith.constant 9.99999993E-9 : f32
    %31 = vector.broadcast %cst_12 : f32 to vector<16x1xf32>
    %32 = arith.maximumf %30, %31 : vector<16x1xf32>
    %cst_13 = arith.constant 0.00787401571 : f32
    %33 = vector.broadcast %cst_13 : f32 to vector<16x1xf32>
    %34 = arith.mulf %32, %33 : vector<16x1xf32>
    %cst_14 = arith.constant 1.270000e+02 : f32
    %35 = vector.broadcast %cst_14 : f32 to vector<16x1xf32>
    %36 = arith.divf %35, %32 : vector<16x1xf32>
    %37 = vector.broadcast %36 : vector<16x1xf32> to vector<16x32xf32>
    %38 = arith.mulf %17, %37 : vector<16x32xf32>
    %39 = math.roundeven %38 : vector<16x32xf32>
    %c-128_i32 = arith.constant -128 : i32
    %c127_i32 = arith.constant 127 : i32
    %40 = arith.sitofp %c-128_i32 : i32 to f32
    %41 = vector.broadcast %40 : f32 to vector<16x32xf32>
    %42 = arith.maximumf %41, %39 : vector<16x32xf32>
    %43 = arith.sitofp %c127_i32 : i32 to f32
    %44 = vector.broadcast %43 : f32 to vector<16x32xf32>
    %45 = arith.minimumf %44, %42 : vector<16x32xf32>
    %46 = arith.fptosi %45 : vector<16x32xf32> to vector<16x32xi32>
    %c255_i32 = arith.constant 255 : i32
    %47 = vector.broadcast %c255_i32 : i32 to vector<16x32xi32>
    %48 = arith.andi %46, %47 : vector<16x32xi32>
    %c-1640531527_i32 = arith.constant -1640531527 : i32
    %49 = arith.muli %3, %c-1640531527_i32 : i32
    %50 = vector.broadcast %49 : i32 to vector<16x32xi32>
    %51 = arith.xori %11, %50 : vector<16x32xi32>
    %c1_i32 = arith.constant 1 : i32
    %c-2048144789_i32 = arith.constant -2048144789 : i32
    %52 = arith.muli %c1_i32, %c-2048144789_i32 : i32
    %53 = vector.broadcast %52 : i32 to vector<16x32xi32>
    %54 = arith.xori %51, %53 : vector<16x32xi32>
    %c16_i32_15 = arith.constant 16 : i32
    %55 = vector.broadcast %c16_i32_15 : i32 to vector<16x32xi32>
    %56 = arith.shrui %54, %55 : vector<16x32xi32>
    %57 = arith.xori %54, %56 : vector<16x32xi32>
    %c2146121005_i32 = arith.constant 2146121005 : i32
    %58 = vector.broadcast %c2146121005_i32 : i32 to vector<16x32xi32>
    %59 = arith.muli %57, %58 : vector<16x32xi32>
    %c15_i32 = arith.constant 15 : i32
    %60 = vector.broadcast %c15_i32 : i32 to vector<16x32xi32>
    %61 = arith.shrui %59, %60 : vector<16x32xi32>
    %62 = arith.xori %59, %61 : vector<16x32xi32>
    %c-2073254261_i32 = arith.constant -2073254261 : i32
    %63 = vector.broadcast %c-2073254261_i32 : i32 to vector<16x32xi32>
    %64 = arith.muli %62, %63 : vector<16x32xi32>
    %c16_i32_16 = arith.constant 16 : i32
    %65 = vector.broadcast %c16_i32_16 : i32 to vector<16x32xi32>
    %66 = arith.shrui %64, %65 : vector<16x32xi32>
    %67 = arith.xori %64, %66 : vector<16x32xi32>
    %c0_i32 = arith.constant 0 : i32
    %68 = vector.broadcast %c0_i32 : i32 to vector<16x32xi32>
    %69 = arith.shrui %67, %68 : vector<16x32xi32>
    %c255_i32_17 = arith.constant 255 : i32
    %70 = vector.broadcast %c255_i32_17 : i32 to vector<16x32xi32>
    %71 = arith.andi %69, %70 : vector<16x32xi32>
    %c3_i32 = arith.constant 3 : i32
    %72 = vector.broadcast %c3_i32 : i32 to vector<16x32xi32>
    %73 = arith.cmpi ult, %71, %72 : vector<16x32xi32>
    %c1_i32_18 = arith.constant 1 : i32
    %c0_i32_19 = arith.constant 0 : i32
    %74 = vector.broadcast %c1_i32_18 : i32 to vector<16x32xi32>
    %75 = vector.broadcast %c0_i32_19 : i32 to vector<16x32xi32>
    %76 = arith.select %73, %74, %75 : vector<16x32xi1>, vector<16x32xi32>
    %77 = arith.xori %48, %76 : vector<16x32xi32>
    %c8_i32 = arith.constant 8 : i32
    %78 = vector.broadcast %c8_i32 : i32 to vector<16x32xi32>
    %79 = arith.shrui %67, %78 : vector<16x32xi32>
    %c255_i32_20 = arith.constant 255 : i32
    %80 = vector.broadcast %c255_i32_20 : i32 to vector<16x32xi32>
    %81 = arith.andi %79, %80 : vector<16x32xi32>
    %c3_i32_21 = arith.constant 3 : i32
    %82 = vector.broadcast %c3_i32_21 : i32 to vector<16x32xi32>
    %83 = arith.cmpi ult, %81, %82 : vector<16x32xi32>
    %c2_i32 = arith.constant 2 : i32
    %c0_i32_22 = arith.constant 0 : i32
    %84 = vector.broadcast %c2_i32 : i32 to vector<16x32xi32>
    %85 = vector.broadcast %c0_i32_22 : i32 to vector<16x32xi32>
    %86 = arith.select %83, %84, %85 : vector<16x32xi1>, vector<16x32xi32>
    %87 = arith.xori %77, %86 : vector<16x32xi32>
    %c16_i32_23 = arith.constant 16 : i32
    %88 = vector.broadcast %c16_i32_23 : i32 to vector<16x32xi32>
    %89 = arith.shrui %67, %88 : vector<16x32xi32>
    %c255_i32_24 = arith.constant 255 : i32
    %90 = vector.broadcast %c255_i32_24 : i32 to vector<16x32xi32>
    %91 = arith.andi %89, %90 : vector<16x32xi32>
    %c3_i32_25 = arith.constant 3 : i32
    %92 = vector.broadcast %c3_i32_25 : i32 to vector<16x32xi32>
    %93 = arith.cmpi ult, %91, %92 : vector<16x32xi32>
    %c4_i32 = arith.constant 4 : i32
    %c0_i32_26 = arith.constant 0 : i32
    %94 = vector.broadcast %c4_i32 : i32 to vector<16x32xi32>
    %95 = vector.broadcast %c0_i32_26 : i32 to vector<16x32xi32>
    %96 = arith.select %93, %94, %95 : vector<16x32xi1>, vector<16x32xi32>
    %97 = arith.xori %87, %96 : vector<16x32xi32>
    %c24_i32 = arith.constant 24 : i32
    %98 = vector.broadcast %c24_i32 : i32 to vector<16x32xi32>
    %99 = arith.shrui %67, %98 : vector<16x32xi32>
    %c255_i32_27 = arith.constant 255 : i32
    %100 = vector.broadcast %c255_i32_27 : i32 to vector<16x32xi32>
    %101 = arith.andi %99, %100 : vector<16x32xi32>
    %c3_i32_28 = arith.constant 3 : i32
    %102 = vector.broadcast %c3_i32_28 : i32 to vector<16x32xi32>
    %103 = arith.cmpi ult, %101, %102 : vector<16x32xi32>
    %c8_i32_29 = arith.constant 8 : i32
    %c0_i32_30 = arith.constant 0 : i32
    %104 = vector.broadcast %c8_i32_29 : i32 to vector<16x32xi32>
    %105 = vector.broadcast %c0_i32_30 : i32 to vector<16x32xi32>
    %106 = arith.select %103, %104, %105 : vector<16x32xi1>, vector<16x32xi32>
    %107 = arith.xori %97, %106 : vector<16x32xi32>
    %c-1640531527_i32_31 = arith.constant -1640531527 : i32
    %108 = arith.muli %3, %c-1640531527_i32_31 : i32
    %109 = vector.broadcast %108 : i32 to vector<16x32xi32>
    %110 = arith.xori %11, %109 : vector<16x32xi32>
    %c2_i32_32 = arith.constant 2 : i32
    %c-2048144789_i32_33 = arith.constant -2048144789 : i32
    %111 = arith.muli %c2_i32_32, %c-2048144789_i32_33 : i32
    %112 = vector.broadcast %111 : i32 to vector<16x32xi32>
    %113 = arith.xori %110, %112 : vector<16x32xi32>
    %c16_i32_34 = arith.constant 16 : i32
    %114 = vector.broadcast %c16_i32_34 : i32 to vector<16x32xi32>
    %115 = arith.shrui %113, %114 : vector<16x32xi32>
    %116 = arith.xori %113, %115 : vector<16x32xi32>
    %c2146121005_i32_35 = arith.constant 2146121005 : i32
    %117 = vector.broadcast %c2146121005_i32_35 : i32 to vector<16x32xi32>
    %118 = arith.muli %116, %117 : vector<16x32xi32>
    %c15_i32_36 = arith.constant 15 : i32
    %119 = vector.broadcast %c15_i32_36 : i32 to vector<16x32xi32>
    %120 = arith.shrui %118, %119 : vector<16x32xi32>
    %121 = arith.xori %118, %120 : vector<16x32xi32>
    %c-2073254261_i32_37 = arith.constant -2073254261 : i32
    %122 = vector.broadcast %c-2073254261_i32_37 : i32 to vector<16x32xi32>
    %123 = arith.muli %121, %122 : vector<16x32xi32>
    %c16_i32_38 = arith.constant 16 : i32
    %124 = vector.broadcast %c16_i32_38 : i32 to vector<16x32xi32>
    %125 = arith.shrui %123, %124 : vector<16x32xi32>
    %126 = arith.xori %123, %125 : vector<16x32xi32>
    %c0_i32_39 = arith.constant 0 : i32
    %127 = vector.broadcast %c0_i32_39 : i32 to vector<16x32xi32>
    %128 = arith.shrui %126, %127 : vector<16x32xi32>
    %c255_i32_40 = arith.constant 255 : i32
    %129 = vector.broadcast %c255_i32_40 : i32 to vector<16x32xi32>
    %130 = arith.andi %128, %129 : vector<16x32xi32>
    %c3_i32_41 = arith.constant 3 : i32
    %131 = vector.broadcast %c3_i32_41 : i32 to vector<16x32xi32>
    %132 = arith.cmpi ult, %130, %131 : vector<16x32xi32>
    %c16_i32_42 = arith.constant 16 : i32
    %c0_i32_43 = arith.constant 0 : i32
    %133 = vector.broadcast %c16_i32_42 : i32 to vector<16x32xi32>
    %134 = vector.broadcast %c0_i32_43 : i32 to vector<16x32xi32>
    %135 = arith.select %132, %133, %134 : vector<16x32xi1>, vector<16x32xi32>
    %136 = arith.xori %107, %135 : vector<16x32xi32>
    %c8_i32_44 = arith.constant 8 : i32
    %137 = vector.broadcast %c8_i32_44 : i32 to vector<16x32xi32>
    %138 = arith.shrui %126, %137 : vector<16x32xi32>
    %c255_i32_45 = arith.constant 255 : i32
    %139 = vector.broadcast %c255_i32_45 : i32 to vector<16x32xi32>
    %140 = arith.andi %138, %139 : vector<16x32xi32>
    %c3_i32_46 = arith.constant 3 : i32
    %141 = vector.broadcast %c3_i32_46 : i32 to vector<16x32xi32>
    %142 = arith.cmpi ult, %140, %141 : vector<16x32xi32>
    %c32_i32_47 = arith.constant 32 : i32
    %c0_i32_48 = arith.constant 0 : i32
    %143 = vector.broadcast %c32_i32_47 : i32 to vector<16x32xi32>
    %144 = vector.broadcast %c0_i32_48 : i32 to vector<16x32xi32>
    %145 = arith.select %142, %143, %144 : vector<16x32xi1>, vector<16x32xi32>
    %146 = arith.xori %136, %145 : vector<16x32xi32>
    %c16_i32_49 = arith.constant 16 : i32
    %147 = vector.broadcast %c16_i32_49 : i32 to vector<16x32xi32>
    %148 = arith.shrui %126, %147 : vector<16x32xi32>
    %c255_i32_50 = arith.constant 255 : i32
    %149 = vector.broadcast %c255_i32_50 : i32 to vector<16x32xi32>
    %150 = arith.andi %148, %149 : vector<16x32xi32>
    %c3_i32_51 = arith.constant 3 : i32
    %151 = vector.broadcast %c3_i32_51 : i32 to vector<16x32xi32>
    %152 = arith.cmpi ult, %150, %151 : vector<16x32xi32>
    %c64_i32 = arith.constant 64 : i32
    %c0_i32_52 = arith.constant 0 : i32
    %153 = vector.broadcast %c64_i32 : i32 to vector<16x32xi32>
    %154 = vector.broadcast %c0_i32_52 : i32 to vector<16x32xi32>
    %155 = arith.select %152, %153, %154 : vector<16x32xi1>, vector<16x32xi32>
    %156 = arith.xori %146, %155 : vector<16x32xi32>
    %c24_i32_53 = arith.constant 24 : i32
    %157 = vector.broadcast %c24_i32_53 : i32 to vector<16x32xi32>
    %158 = arith.shrui %126, %157 : vector<16x32xi32>
    %c255_i32_54 = arith.constant 255 : i32
    %159 = vector.broadcast %c255_i32_54 : i32 to vector<16x32xi32>
    %160 = arith.andi %158, %159 : vector<16x32xi32>
    %c3_i32_55 = arith.constant 3 : i32
    %161 = vector.broadcast %c3_i32_55 : i32 to vector<16x32xi32>
    %162 = arith.cmpi ult, %160, %161 : vector<16x32xi32>
    %c128_i32 = arith.constant 128 : i32
    %c0_i32_56 = arith.constant 0 : i32
    %163 = vector.broadcast %c128_i32 : i32 to vector<16x32xi32>
    %164 = vector.broadcast %c0_i32_56 : i32 to vector<16x32xi32>
    %165 = arith.select %162, %163, %164 : vector<16x32xi1>, vector<16x32xi32>
    %166 = arith.xori %156, %165 : vector<16x32xi32>
    %c24_i32_57 = arith.constant 24 : i32
    %167 = vector.broadcast %c24_i32_57 : i32 to vector<16x32xi32>
    %168 = arith.shli %166, %167 : vector<16x32xi32>
    %c24_i32_58 = arith.constant 24 : i32
    %169 = vector.broadcast %c24_i32_58 : i32 to vector<16x32xi32>
    %170 = arith.shrsi %168, %169 : vector<16x32xi32>
    %171 = arith.sitofp %170 : vector<16x32xi32> to vector<16x32xf32>
    %172 = vector.broadcast %34 : vector<16x1xf32> to vector<16x32xf32>
    %173 = arith.mulf %171, %172 : vector<16x32xf32>
    %174 = vector.broadcast %1 : vector<1x32xf32> to vector<16x32xf32>
    %175 = arith.mulf %174, %173 : vector<16x32xf32>
    %176 = math.absf %175 : vector<16x32xf32>
    %cst_59 = arith.constant dense<0xFF800000> : vector<16xf32>
    %177 = vector.multi_reduction <maximumf>, %176, %cst_59 [1] : vector<16x32xf32> to vector<16xf32>
    %178 = vector.shape_cast %177 : vector<16xf32> to vector<16x1xf32>
    %cst_60 = arith.constant 9.99999993E-9 : f32
    %179 = vector.broadcast %cst_60 : f32 to vector<16x1xf32>
    %180 = arith.maximumf %178, %179 : vector<16x1xf32>
    %cst_61 = arith.constant 0.00787401571 : f32
    %181 = vector.broadcast %cst_61 : f32 to vector<16x1xf32>
    %182 = arith.mulf %180, %181 : vector<16x1xf32>
    %cst_62 = arith.constant 1.270000e+02 : f32
    %183 = vector.broadcast %cst_62 : f32 to vector<16x1xf32>
    %184 = arith.divf %183, %180 : vector<16x1xf32>
    %185 = vector.broadcast %184 : vector<16x1xf32> to vector<16x32xf32>
    %186 = arith.mulf %175, %185 : vector<16x32xf32>
    %187 = math.roundeven %186 : vector<16x32xf32>
    %c-128_i32_63 = arith.constant -128 : i32
    %c127_i32_64 = arith.constant 127 : i32
    %188 = arith.sitofp %c-128_i32_63 : i32 to f32
    %189 = vector.broadcast %188 : f32 to vector<16x32xf32>
    %190 = arith.maximumf %189, %187 : vector<16x32xf32>
    %191 = arith.sitofp %c127_i32_64 : i32 to f32
    %192 = vector.broadcast %191 : f32 to vector<16x32xf32>
    %193 = arith.minimumf %192, %190 : vector<16x32xf32>
    %194 = arith.fptosi %193 : vector<16x32xf32> to vector<16x32xi32>
    %c255_i32_65 = arith.constant 255 : i32
    %195 = vector.broadcast %c255_i32_65 : i32 to vector<16x32xi32>
    %196 = arith.andi %194, %195 : vector<16x32xi32>
    %c-1640531527_i32_66 = arith.constant -1640531527 : i32
    %197 = arith.muli %3, %c-1640531527_i32_66 : i32
    %198 = vector.broadcast %197 : i32 to vector<16x32xi32>
    %199 = arith.xori %11, %198 : vector<16x32xi32>
    %c3_i32_67 = arith.constant 3 : i32
    %c-2048144789_i32_68 = arith.constant -2048144789 : i32
    %200 = arith.muli %c3_i32_67, %c-2048144789_i32_68 : i32
    %201 = vector.broadcast %200 : i32 to vector<16x32xi32>
    %202 = arith.xori %199, %201 : vector<16x32xi32>
    %c16_i32_69 = arith.constant 16 : i32
    %203 = vector.broadcast %c16_i32_69 : i32 to vector<16x32xi32>
    %204 = arith.shrui %202, %203 : vector<16x32xi32>
    %205 = arith.xori %202, %204 : vector<16x32xi32>
    %c2146121005_i32_70 = arith.constant 2146121005 : i32
    %206 = vector.broadcast %c2146121005_i32_70 : i32 to vector<16x32xi32>
    %207 = arith.muli %205, %206 : vector<16x32xi32>
    %c15_i32_71 = arith.constant 15 : i32
    %208 = vector.broadcast %c15_i32_71 : i32 to vector<16x32xi32>
    %209 = arith.shrui %207, %208 : vector<16x32xi32>
    %210 = arith.xori %207, %209 : vector<16x32xi32>
    %c-2073254261_i32_72 = arith.constant -2073254261 : i32
    %211 = vector.broadcast %c-2073254261_i32_72 : i32 to vector<16x32xi32>
    %212 = arith.muli %210, %211 : vector<16x32xi32>
    %c16_i32_73 = arith.constant 16 : i32
    %213 = vector.broadcast %c16_i32_73 : i32 to vector<16x32xi32>
    %214 = arith.shrui %212, %213 : vector<16x32xi32>
    %215 = arith.xori %212, %214 : vector<16x32xi32>
    %c0_i32_74 = arith.constant 0 : i32
    %216 = vector.broadcast %c0_i32_74 : i32 to vector<16x32xi32>
    %217 = arith.shrui %215, %216 : vector<16x32xi32>
    %c255_i32_75 = arith.constant 255 : i32
    %218 = vector.broadcast %c255_i32_75 : i32 to vector<16x32xi32>
    %219 = arith.andi %217, %218 : vector<16x32xi32>
    %c3_i32_76 = arith.constant 3 : i32
    %220 = vector.broadcast %c3_i32_76 : i32 to vector<16x32xi32>
    %221 = arith.cmpi ult, %219, %220 : vector<16x32xi32>
    %c1_i32_77 = arith.constant 1 : i32
    %c0_i32_78 = arith.constant 0 : i32
    %222 = vector.broadcast %c1_i32_77 : i32 to vector<16x32xi32>
    %223 = vector.broadcast %c0_i32_78 : i32 to vector<16x32xi32>
    %224 = arith.select %221, %222, %223 : vector<16x32xi1>, vector<16x32xi32>
    %225 = arith.xori %196, %224 : vector<16x32xi32>
    %c8_i32_79 = arith.constant 8 : i32
    %226 = vector.broadcast %c8_i32_79 : i32 to vector<16x32xi32>
    %227 = arith.shrui %215, %226 : vector<16x32xi32>
    %c255_i32_80 = arith.constant 255 : i32
    %228 = vector.broadcast %c255_i32_80 : i32 to vector<16x32xi32>
    %229 = arith.andi %227, %228 : vector<16x32xi32>
    %c3_i32_81 = arith.constant 3 : i32
    %230 = vector.broadcast %c3_i32_81 : i32 to vector<16x32xi32>
    %231 = arith.cmpi ult, %229, %230 : vector<16x32xi32>
    %c2_i32_82 = arith.constant 2 : i32
    %c0_i32_83 = arith.constant 0 : i32
    %232 = vector.broadcast %c2_i32_82 : i32 to vector<16x32xi32>
    %233 = vector.broadcast %c0_i32_83 : i32 to vector<16x32xi32>
    %234 = arith.select %231, %232, %233 : vector<16x32xi1>, vector<16x32xi32>
    %235 = arith.xori %225, %234 : vector<16x32xi32>
    %c16_i32_84 = arith.constant 16 : i32
    %236 = vector.broadcast %c16_i32_84 : i32 to vector<16x32xi32>
    %237 = arith.shrui %215, %236 : vector<16x32xi32>
    %c255_i32_85 = arith.constant 255 : i32
    %238 = vector.broadcast %c255_i32_85 : i32 to vector<16x32xi32>
    %239 = arith.andi %237, %238 : vector<16x32xi32>
    %c3_i32_86 = arith.constant 3 : i32
    %240 = vector.broadcast %c3_i32_86 : i32 to vector<16x32xi32>
    %241 = arith.cmpi ult, %239, %240 : vector<16x32xi32>
    %c4_i32_87 = arith.constant 4 : i32
    %c0_i32_88 = arith.constant 0 : i32
    %242 = vector.broadcast %c4_i32_87 : i32 to vector<16x32xi32>
    %243 = vector.broadcast %c0_i32_88 : i32 to vector<16x32xi32>
    %244 = arith.select %241, %242, %243 : vector<16x32xi1>, vector<16x32xi32>
    %245 = arith.xori %235, %244 : vector<16x32xi32>
    %c24_i32_89 = arith.constant 24 : i32
    %246 = vector.broadcast %c24_i32_89 : i32 to vector<16x32xi32>
    %247 = arith.shrui %215, %246 : vector<16x32xi32>
    %c255_i32_90 = arith.constant 255 : i32
    %248 = vector.broadcast %c255_i32_90 : i32 to vector<16x32xi32>
    %249 = arith.andi %247, %248 : vector<16x32xi32>
    %c3_i32_91 = arith.constant 3 : i32
    %250 = vector.broadcast %c3_i32_91 : i32 to vector<16x32xi32>
    %251 = arith.cmpi ult, %249, %250 : vector<16x32xi32>
    %c8_i32_92 = arith.constant 8 : i32
    %c0_i32_93 = arith.constant 0 : i32
    %252 = vector.broadcast %c8_i32_92 : i32 to vector<16x32xi32>
    %253 = vector.broadcast %c0_i32_93 : i32 to vector<16x32xi32>
    %254 = arith.select %251, %252, %253 : vector<16x32xi1>, vector<16x32xi32>
    %255 = arith.xori %245, %254 : vector<16x32xi32>
    %c-1640531527_i32_94 = arith.constant -1640531527 : i32
    %256 = arith.muli %3, %c-1640531527_i32_94 : i32
    %257 = vector.broadcast %256 : i32 to vector<16x32xi32>
    %258 = arith.xori %11, %257 : vector<16x32xi32>
    %c4_i32_95 = arith.constant 4 : i32
    %c-2048144789_i32_96 = arith.constant -2048144789 : i32
    %259 = arith.muli %c4_i32_95, %c-2048144789_i32_96 : i32
    %260 = vector.broadcast %259 : i32 to vector<16x32xi32>
    %261 = arith.xori %258, %260 : vector<16x32xi32>
    %c16_i32_97 = arith.constant 16 : i32
    %262 = vector.broadcast %c16_i32_97 : i32 to vector<16x32xi32>
    %263 = arith.shrui %261, %262 : vector<16x32xi32>
    %264 = arith.xori %261, %263 : vector<16x32xi32>
    %c2146121005_i32_98 = arith.constant 2146121005 : i32
    %265 = vector.broadcast %c2146121005_i32_98 : i32 to vector<16x32xi32>
    %266 = arith.muli %264, %265 : vector<16x32xi32>
    %c15_i32_99 = arith.constant 15 : i32
    %267 = vector.broadcast %c15_i32_99 : i32 to vector<16x32xi32>
    %268 = arith.shrui %266, %267 : vector<16x32xi32>
    %269 = arith.xori %266, %268 : vector<16x32xi32>
    %c-2073254261_i32_100 = arith.constant -2073254261 : i32
    %270 = vector.broadcast %c-2073254261_i32_100 : i32 to vector<16x32xi32>
    %271 = arith.muli %269, %270 : vector<16x32xi32>
    %c16_i32_101 = arith.constant 16 : i32
    %272 = vector.broadcast %c16_i32_101 : i32 to vector<16x32xi32>
    %273 = arith.shrui %271, %272 : vector<16x32xi32>
    %274 = arith.xori %271, %273 : vector<16x32xi32>
    %c0_i32_102 = arith.constant 0 : i32
    %275 = vector.broadcast %c0_i32_102 : i32 to vector<16x32xi32>
    %276 = arith.shrui %274, %275 : vector<16x32xi32>
    %c255_i32_103 = arith.constant 255 : i32
    %277 = vector.broadcast %c255_i32_103 : i32 to vector<16x32xi32>
    %278 = arith.andi %276, %277 : vector<16x32xi32>
    %c3_i32_104 = arith.constant 3 : i32
    %279 = vector.broadcast %c3_i32_104 : i32 to vector<16x32xi32>
    %280 = arith.cmpi ult, %278, %279 : vector<16x32xi32>
    %c16_i32_105 = arith.constant 16 : i32
    %c0_i32_106 = arith.constant 0 : i32
    %281 = vector.broadcast %c16_i32_105 : i32 to vector<16x32xi32>
    %282 = vector.broadcast %c0_i32_106 : i32 to vector<16x32xi32>
    %283 = arith.select %280, %281, %282 : vector<16x32xi1>, vector<16x32xi32>
    %284 = arith.xori %255, %283 : vector<16x32xi32>
    %c8_i32_107 = arith.constant 8 : i32
    %285 = vector.broadcast %c8_i32_107 : i32 to vector<16x32xi32>
    %286 = arith.shrui %274, %285 : vector<16x32xi32>
    %c255_i32_108 = arith.constant 255 : i32
    %287 = vector.broadcast %c255_i32_108 : i32 to vector<16x32xi32>
    %288 = arith.andi %286, %287 : vector<16x32xi32>
    %c3_i32_109 = arith.constant 3 : i32
    %289 = vector.broadcast %c3_i32_109 : i32 to vector<16x32xi32>
    %290 = arith.cmpi ult, %288, %289 : vector<16x32xi32>
    %c32_i32_110 = arith.constant 32 : i32
    %c0_i32_111 = arith.constant 0 : i32
    %291 = vector.broadcast %c32_i32_110 : i32 to vector<16x32xi32>
    %292 = vector.broadcast %c0_i32_111 : i32 to vector<16x32xi32>
    %293 = arith.select %290, %291, %292 : vector<16x32xi1>, vector<16x32xi32>
    %294 = arith.xori %284, %293 : vector<16x32xi32>
    %c16_i32_112 = arith.constant 16 : i32
    %295 = vector.broadcast %c16_i32_112 : i32 to vector<16x32xi32>
    %296 = arith.shrui %274, %295 : vector<16x32xi32>
    %c255_i32_113 = arith.constant 255 : i32
    %297 = vector.broadcast %c255_i32_113 : i32 to vector<16x32xi32>
    %298 = arith.andi %296, %297 : vector<16x32xi32>
    %c3_i32_114 = arith.constant 3 : i32
    %299 = vector.broadcast %c3_i32_114 : i32 to vector<16x32xi32>
    %300 = arith.cmpi ult, %298, %299 : vector<16x32xi32>
    %c64_i32_115 = arith.constant 64 : i32
    %c0_i32_116 = arith.constant 0 : i32
    %301 = vector.broadcast %c64_i32_115 : i32 to vector<16x32xi32>
    %302 = vector.broadcast %c0_i32_116 : i32 to vector<16x32xi32>
    %303 = arith.select %300, %301, %302 : vector<16x32xi1>, vector<16x32xi32>
    %304 = arith.xori %294, %303 : vector<16x32xi32>
    %c24_i32_117 = arith.constant 24 : i32
    %305 = vector.broadcast %c24_i32_117 : i32 to vector<16x32xi32>
    %306 = arith.shrui %274, %305 : vector<16x32xi32>
    %c255_i32_118 = arith.constant 255 : i32
    %307 = vector.broadcast %c255_i32_118 : i32 to vector<16x32xi32>
    %308 = arith.andi %306, %307 : vector<16x32xi32>
    %c3_i32_119 = arith.constant 3 : i32
    %309 = vector.broadcast %c3_i32_119 : i32 to vector<16x32xi32>
    %310 = arith.cmpi ult, %308, %309 : vector<16x32xi32>
    %c128_i32_120 = arith.constant 128 : i32
    %c0_i32_121 = arith.constant 0 : i32
    %311 = vector.broadcast %c128_i32_120 : i32 to vector<16x32xi32>
    %312 = vector.broadcast %c0_i32_121 : i32 to vector<16x32xi32>
    %313 = arith.select %310, %311, %312 : vector<16x32xi1>, vector<16x32xi32>
    %314 = arith.xori %304, %313 : vector<16x32xi32>
    %c24_i32_122 = arith.constant 24 : i32
    %315 = vector.broadcast %c24_i32_122 : i32 to vector<16x32xi32>
    %316 = arith.shli %314, %315 : vector<16x32xi32>
    %c24_i32_123 = arith.constant 24 : i32
    %317 = vector.broadcast %c24_i32_123 : i32 to vector<16x32xi32>
    %318 = arith.shrsi %316, %317 : vector<16x32xi32>
    %319 = arith.sitofp %318 : vector<16x32xi32> to vector<16x32xf32>
    %320 = vector.broadcast %182 : vector<16x1xf32> to vector<16x32xf32>
    %321 = arith.mulf %319, %320 : vector<16x32xf32>
    %322 = vector.broadcast %27 : vector<16x1xf32> to vector<16x32xf32>
    %323 = arith.mulf %321, %322 : vector<16x32xf32>
    %324 = math.absf %323 : vector<16x32xf32>
    %cst_124 = arith.constant dense<0xFF800000> : vector<16xf32>
    %325 = vector.multi_reduction <maximumf>, %324, %cst_124 [1] : vector<16x32xf32> to vector<16xf32>
    %326 = vector.shape_cast %325 : vector<16xf32> to vector<16x1xf32>
    %cst_125 = arith.constant 9.99999993E-9 : f32
    %327 = vector.broadcast %cst_125 : f32 to vector<16x1xf32>
    %328 = arith.maximumf %326, %327 : vector<16x1xf32>
    %cst_126 = arith.constant 0.00787401571 : f32
    %329 = vector.broadcast %cst_126 : f32 to vector<16x1xf32>
    %330 = arith.mulf %328, %329 : vector<16x1xf32>
    %cst_127 = arith.constant 1.270000e+02 : f32
    %331 = vector.broadcast %cst_127 : f32 to vector<16x1xf32>
    %332 = arith.divf %331, %328 : vector<16x1xf32>
    %333 = vector.broadcast %332 : vector<16x1xf32> to vector<16x32xf32>
    %334 = arith.mulf %323, %333 : vector<16x32xf32>
    %335 = math.roundeven %334 : vector<16x32xf32>
    %c-128_i32_128 = arith.constant -128 : i32
    %c127_i32_129 = arith.constant 127 : i32
    %336 = arith.sitofp %c-128_i32_128 : i32 to f32
    %337 = vector.broadcast %336 : f32 to vector<16x32xf32>
    %338 = arith.maximumf %337, %335 : vector<16x32xf32>
    %339 = arith.sitofp %c127_i32_129 : i32 to f32
    %340 = vector.broadcast %339 : f32 to vector<16x32xf32>
    %341 = arith.minimumf %340, %338 : vector<16x32xf32>
    %342 = arith.fptosi %341 : vector<16x32xf32> to vector<16x32xi32>
    %c255_i32_130 = arith.constant 255 : i32
    %343 = vector.broadcast %c255_i32_130 : i32 to vector<16x32xi32>
    %344 = arith.andi %342, %343 : vector<16x32xi32>
    %c-1640531527_i32_131 = arith.constant -1640531527 : i32
    %345 = arith.muli %3, %c-1640531527_i32_131 : i32
    %346 = vector.broadcast %345 : i32 to vector<16x32xi32>
    %347 = arith.xori %11, %346 : vector<16x32xi32>
    %c5_i32 = arith.constant 5 : i32
    %c-2048144789_i32_132 = arith.constant -2048144789 : i32
    %348 = arith.muli %c5_i32, %c-2048144789_i32_132 : i32
    %349 = vector.broadcast %348 : i32 to vector<16x32xi32>
    %350 = arith.xori %347, %349 : vector<16x32xi32>
    %c16_i32_133 = arith.constant 16 : i32
    %351 = vector.broadcast %c16_i32_133 : i32 to vector<16x32xi32>
    %352 = arith.shrui %350, %351 : vector<16x32xi32>
    %353 = arith.xori %350, %352 : vector<16x32xi32>
    %c2146121005_i32_134 = arith.constant 2146121005 : i32
    %354 = vector.broadcast %c2146121005_i32_134 : i32 to vector<16x32xi32>
    %355 = arith.muli %353, %354 : vector<16x32xi32>
    %c15_i32_135 = arith.constant 15 : i32
    %356 = vector.broadcast %c15_i32_135 : i32 to vector<16x32xi32>
    %357 = arith.shrui %355, %356 : vector<16x32xi32>
    %358 = arith.xori %355, %357 : vector<16x32xi32>
    %c-2073254261_i32_136 = arith.constant -2073254261 : i32
    %359 = vector.broadcast %c-2073254261_i32_136 : i32 to vector<16x32xi32>
    %360 = arith.muli %358, %359 : vector<16x32xi32>
    %c16_i32_137 = arith.constant 16 : i32
    %361 = vector.broadcast %c16_i32_137 : i32 to vector<16x32xi32>
    %362 = arith.shrui %360, %361 : vector<16x32xi32>
    %363 = arith.xori %360, %362 : vector<16x32xi32>
    %c0_i32_138 = arith.constant 0 : i32
    %364 = vector.broadcast %c0_i32_138 : i32 to vector<16x32xi32>
    %365 = arith.shrui %363, %364 : vector<16x32xi32>
    %c255_i32_139 = arith.constant 255 : i32
    %366 = vector.broadcast %c255_i32_139 : i32 to vector<16x32xi32>
    %367 = arith.andi %365, %366 : vector<16x32xi32>
    %c3_i32_140 = arith.constant 3 : i32
    %368 = vector.broadcast %c3_i32_140 : i32 to vector<16x32xi32>
    %369 = arith.cmpi ult, %367, %368 : vector<16x32xi32>
    %c1_i32_141 = arith.constant 1 : i32
    %c0_i32_142 = arith.constant 0 : i32
    %370 = vector.broadcast %c1_i32_141 : i32 to vector<16x32xi32>
    %371 = vector.broadcast %c0_i32_142 : i32 to vector<16x32xi32>
    %372 = arith.select %369, %370, %371 : vector<16x32xi1>, vector<16x32xi32>
    %373 = arith.xori %344, %372 : vector<16x32xi32>
    %c8_i32_143 = arith.constant 8 : i32
    %374 = vector.broadcast %c8_i32_143 : i32 to vector<16x32xi32>
    %375 = arith.shrui %363, %374 : vector<16x32xi32>
    %c255_i32_144 = arith.constant 255 : i32
    %376 = vector.broadcast %c255_i32_144 : i32 to vector<16x32xi32>
    %377 = arith.andi %375, %376 : vector<16x32xi32>
    %c3_i32_145 = arith.constant 3 : i32
    %378 = vector.broadcast %c3_i32_145 : i32 to vector<16x32xi32>
    %379 = arith.cmpi ult, %377, %378 : vector<16x32xi32>
    %c2_i32_146 = arith.constant 2 : i32
    %c0_i32_147 = arith.constant 0 : i32
    %380 = vector.broadcast %c2_i32_146 : i32 to vector<16x32xi32>
    %381 = vector.broadcast %c0_i32_147 : i32 to vector<16x32xi32>
    %382 = arith.select %379, %380, %381 : vector<16x32xi1>, vector<16x32xi32>
    %383 = arith.xori %373, %382 : vector<16x32xi32>
    %c16_i32_148 = arith.constant 16 : i32
    %384 = vector.broadcast %c16_i32_148 : i32 to vector<16x32xi32>
    %385 = arith.shrui %363, %384 : vector<16x32xi32>
    %c255_i32_149 = arith.constant 255 : i32
    %386 = vector.broadcast %c255_i32_149 : i32 to vector<16x32xi32>
    %387 = arith.andi %385, %386 : vector<16x32xi32>
    %c3_i32_150 = arith.constant 3 : i32
    %388 = vector.broadcast %c3_i32_150 : i32 to vector<16x32xi32>
    %389 = arith.cmpi ult, %387, %388 : vector<16x32xi32>
    %c4_i32_151 = arith.constant 4 : i32
    %c0_i32_152 = arith.constant 0 : i32
    %390 = vector.broadcast %c4_i32_151 : i32 to vector<16x32xi32>
    %391 = vector.broadcast %c0_i32_152 : i32 to vector<16x32xi32>
    %392 = arith.select %389, %390, %391 : vector<16x32xi1>, vector<16x32xi32>
    %393 = arith.xori %383, %392 : vector<16x32xi32>
    %c24_i32_153 = arith.constant 24 : i32
    %394 = vector.broadcast %c24_i32_153 : i32 to vector<16x32xi32>
    %395 = arith.shrui %363, %394 : vector<16x32xi32>
    %c255_i32_154 = arith.constant 255 : i32
    %396 = vector.broadcast %c255_i32_154 : i32 to vector<16x32xi32>
    %397 = arith.andi %395, %396 : vector<16x32xi32>
    %c3_i32_155 = arith.constant 3 : i32
    %398 = vector.broadcast %c3_i32_155 : i32 to vector<16x32xi32>
    %399 = arith.cmpi ult, %397, %398 : vector<16x32xi32>
    %c8_i32_156 = arith.constant 8 : i32
    %c0_i32_157 = arith.constant 0 : i32
    %400 = vector.broadcast %c8_i32_156 : i32 to vector<16x32xi32>
    %401 = vector.broadcast %c0_i32_157 : i32 to vector<16x32xi32>
    %402 = arith.select %399, %400, %401 : vector<16x32xi1>, vector<16x32xi32>
    %403 = arith.xori %393, %402 : vector<16x32xi32>
    %c-1640531527_i32_158 = arith.constant -1640531527 : i32
    %404 = arith.muli %3, %c-1640531527_i32_158 : i32
    %405 = vector.broadcast %404 : i32 to vector<16x32xi32>
    %406 = arith.xori %11, %405 : vector<16x32xi32>
    %c6_i32 = arith.constant 6 : i32
    %c-2048144789_i32_159 = arith.constant -2048144789 : i32
    %407 = arith.muli %c6_i32, %c-2048144789_i32_159 : i32
    %408 = vector.broadcast %407 : i32 to vector<16x32xi32>
    %409 = arith.xori %406, %408 : vector<16x32xi32>
    %c16_i32_160 = arith.constant 16 : i32
    %410 = vector.broadcast %c16_i32_160 : i32 to vector<16x32xi32>
    %411 = arith.shrui %409, %410 : vector<16x32xi32>
    %412 = arith.xori %409, %411 : vector<16x32xi32>
    %c2146121005_i32_161 = arith.constant 2146121005 : i32
    %413 = vector.broadcast %c2146121005_i32_161 : i32 to vector<16x32xi32>
    %414 = arith.muli %412, %413 : vector<16x32xi32>
    %c15_i32_162 = arith.constant 15 : i32
    %415 = vector.broadcast %c15_i32_162 : i32 to vector<16x32xi32>
    %416 = arith.shrui %414, %415 : vector<16x32xi32>
    %417 = arith.xori %414, %416 : vector<16x32xi32>
    %c-2073254261_i32_163 = arith.constant -2073254261 : i32
    %418 = vector.broadcast %c-2073254261_i32_163 : i32 to vector<16x32xi32>
    %419 = arith.muli %417, %418 : vector<16x32xi32>
    %c16_i32_164 = arith.constant 16 : i32
    %420 = vector.broadcast %c16_i32_164 : i32 to vector<16x32xi32>
    %421 = arith.shrui %419, %420 : vector<16x32xi32>
    %422 = arith.xori %419, %421 : vector<16x32xi32>
    %c0_i32_165 = arith.constant 0 : i32
    %423 = vector.broadcast %c0_i32_165 : i32 to vector<16x32xi32>
    %424 = arith.shrui %422, %423 : vector<16x32xi32>
    %c255_i32_166 = arith.constant 255 : i32
    %425 = vector.broadcast %c255_i32_166 : i32 to vector<16x32xi32>
    %426 = arith.andi %424, %425 : vector<16x32xi32>
    %c3_i32_167 = arith.constant 3 : i32
    %427 = vector.broadcast %c3_i32_167 : i32 to vector<16x32xi32>
    %428 = arith.cmpi ult, %426, %427 : vector<16x32xi32>
    %c16_i32_168 = arith.constant 16 : i32
    %c0_i32_169 = arith.constant 0 : i32
    %429 = vector.broadcast %c16_i32_168 : i32 to vector<16x32xi32>
    %430 = vector.broadcast %c0_i32_169 : i32 to vector<16x32xi32>
    %431 = arith.select %428, %429, %430 : vector<16x32xi1>, vector<16x32xi32>
    %432 = arith.xori %403, %431 : vector<16x32xi32>
    %c8_i32_170 = arith.constant 8 : i32
    %433 = vector.broadcast %c8_i32_170 : i32 to vector<16x32xi32>
    %434 = arith.shrui %422, %433 : vector<16x32xi32>
    %c255_i32_171 = arith.constant 255 : i32
    %435 = vector.broadcast %c255_i32_171 : i32 to vector<16x32xi32>
    %436 = arith.andi %434, %435 : vector<16x32xi32>
    %c3_i32_172 = arith.constant 3 : i32
    %437 = vector.broadcast %c3_i32_172 : i32 to vector<16x32xi32>
    %438 = arith.cmpi ult, %436, %437 : vector<16x32xi32>
    %c32_i32_173 = arith.constant 32 : i32
    %c0_i32_174 = arith.constant 0 : i32
    %439 = vector.broadcast %c32_i32_173 : i32 to vector<16x32xi32>
    %440 = vector.broadcast %c0_i32_174 : i32 to vector<16x32xi32>
    %441 = arith.select %438, %439, %440 : vector<16x32xi1>, vector<16x32xi32>
    %442 = arith.xori %432, %441 : vector<16x32xi32>
    %c16_i32_175 = arith.constant 16 : i32
    %443 = vector.broadcast %c16_i32_175 : i32 to vector<16x32xi32>
    %444 = arith.shrui %422, %443 : vector<16x32xi32>
    %c255_i32_176 = arith.constant 255 : i32
    %445 = vector.broadcast %c255_i32_176 : i32 to vector<16x32xi32>
    %446 = arith.andi %444, %445 : vector<16x32xi32>
    %c3_i32_177 = arith.constant 3 : i32
    %447 = vector.broadcast %c3_i32_177 : i32 to vector<16x32xi32>
    %448 = arith.cmpi ult, %446, %447 : vector<16x32xi32>
    %c64_i32_178 = arith.constant 64 : i32
    %c0_i32_179 = arith.constant 0 : i32
    %449 = vector.broadcast %c64_i32_178 : i32 to vector<16x32xi32>
    %450 = vector.broadcast %c0_i32_179 : i32 to vector<16x32xi32>
    %451 = arith.select %448, %449, %450 : vector<16x32xi1>, vector<16x32xi32>
    %452 = arith.xori %442, %451 : vector<16x32xi32>
    %c24_i32_180 = arith.constant 24 : i32
    %453 = vector.broadcast %c24_i32_180 : i32 to vector<16x32xi32>
    %454 = arith.shrui %422, %453 : vector<16x32xi32>
    %c255_i32_181 = arith.constant 255 : i32
    %455 = vector.broadcast %c255_i32_181 : i32 to vector<16x32xi32>
    %456 = arith.andi %454, %455 : vector<16x32xi32>
    %c3_i32_182 = arith.constant 3 : i32
    %457 = vector.broadcast %c3_i32_182 : i32 to vector<16x32xi32>
    %458 = arith.cmpi ult, %456, %457 : vector<16x32xi32>
    %c128_i32_183 = arith.constant 128 : i32
    %c0_i32_184 = arith.constant 0 : i32
    %459 = vector.broadcast %c128_i32_183 : i32 to vector<16x32xi32>
    %460 = vector.broadcast %c0_i32_184 : i32 to vector<16x32xi32>
    %461 = arith.select %458, %459, %460 : vector<16x32xi1>, vector<16x32xi32>
    %462 = arith.xori %452, %461 : vector<16x32xi32>
    %c24_i32_185 = arith.constant 24 : i32
    %463 = vector.broadcast %c24_i32_185 : i32 to vector<16x32xi32>
    %464 = arith.shli %462, %463 : vector<16x32xi32>
    %c24_i32_186 = arith.constant 24 : i32
    %465 = vector.broadcast %c24_i32_186 : i32 to vector<16x32xi32>
    %466 = arith.shrsi %464, %465 : vector<16x32xi32>
    %467 = arith.sitofp %466 : vector<16x32xi32> to vector<16x32xf32>
    %468 = vector.broadcast %330 : vector<16x1xf32> to vector<16x32xf32>
    %469 = arith.mulf %467, %468 : vector<16x32xf32>
    %470 = vector.broadcast %2 : vector<1x32xf32> to vector<16x32xf32>
    %471 = arith.addf %469, %470 : vector<16x32xf32>
    %472 = math.absf %471 : vector<16x32xf32>
    %cst_187 = arith.constant dense<0xFF800000> : vector<16xf32>
    %473 = vector.multi_reduction <maximumf>, %472, %cst_187 [1] : vector<16x32xf32> to vector<16xf32>
    %474 = vector.shape_cast %473 : vector<16xf32> to vector<16x1xf32>
    %cst_188 = arith.constant 9.99999993E-9 : f32
    %475 = vector.broadcast %cst_188 : f32 to vector<16x1xf32>
    %476 = arith.maximumf %474, %475 : vector<16x1xf32>
    %cst_189 = arith.constant 0.00787401571 : f32
    %477 = vector.broadcast %cst_189 : f32 to vector<16x1xf32>
    %478 = arith.mulf %476, %477 : vector<16x1xf32>
    %cst_190 = arith.constant 1.270000e+02 : f32
    %479 = vector.broadcast %cst_190 : f32 to vector<16x1xf32>
    %480 = arith.divf %479, %476 : vector<16x1xf32>
    %481 = vector.broadcast %480 : vector<16x1xf32> to vector<16x32xf32>
    %482 = arith.mulf %471, %481 : vector<16x32xf32>
    %483 = math.roundeven %482 : vector<16x32xf32>
    %c-128_i32_191 = arith.constant -128 : i32
    %c127_i32_192 = arith.constant 127 : i32
    %484 = arith.sitofp %c-128_i32_191 : i32 to f32
    %485 = vector.broadcast %484 : f32 to vector<16x32xf32>
    %486 = arith.maximumf %485, %483 : vector<16x32xf32>
    %487 = arith.sitofp %c127_i32_192 : i32 to f32
    %488 = vector.broadcast %487 : f32 to vector<16x32xf32>
    %489 = arith.minimumf %488, %486 : vector<16x32xf32>
    %490 = arith.fptosi %489 : vector<16x32xf32> to vector<16x32xi32>
    %c255_i32_193 = arith.constant 255 : i32
    %491 = vector.broadcast %c255_i32_193 : i32 to vector<16x32xi32>
    %492 = arith.andi %490, %491 : vector<16x32xi32>
    %c-1640531527_i32_194 = arith.constant -1640531527 : i32
    %493 = arith.muli %3, %c-1640531527_i32_194 : i32
    %494 = vector.broadcast %493 : i32 to vector<16x32xi32>
    %495 = arith.xori %11, %494 : vector<16x32xi32>
    %c7_i32 = arith.constant 7 : i32
    %c-2048144789_i32_195 = arith.constant -2048144789 : i32
    %496 = arith.muli %c7_i32, %c-2048144789_i32_195 : i32
    %497 = vector.broadcast %496 : i32 to vector<16x32xi32>
    %498 = arith.xori %495, %497 : vector<16x32xi32>
    %c16_i32_196 = arith.constant 16 : i32
    %499 = vector.broadcast %c16_i32_196 : i32 to vector<16x32xi32>
    %500 = arith.shrui %498, %499 : vector<16x32xi32>
    %501 = arith.xori %498, %500 : vector<16x32xi32>
    %c2146121005_i32_197 = arith.constant 2146121005 : i32
    %502 = vector.broadcast %c2146121005_i32_197 : i32 to vector<16x32xi32>
    %503 = arith.muli %501, %502 : vector<16x32xi32>
    %c15_i32_198 = arith.constant 15 : i32
    %504 = vector.broadcast %c15_i32_198 : i32 to vector<16x32xi32>
    %505 = arith.shrui %503, %504 : vector<16x32xi32>
    %506 = arith.xori %503, %505 : vector<16x32xi32>
    %c-2073254261_i32_199 = arith.constant -2073254261 : i32
    %507 = vector.broadcast %c-2073254261_i32_199 : i32 to vector<16x32xi32>
    %508 = arith.muli %506, %507 : vector<16x32xi32>
    %c16_i32_200 = arith.constant 16 : i32
    %509 = vector.broadcast %c16_i32_200 : i32 to vector<16x32xi32>
    %510 = arith.shrui %508, %509 : vector<16x32xi32>
    %511 = arith.xori %508, %510 : vector<16x32xi32>
    %c0_i32_201 = arith.constant 0 : i32
    %512 = vector.broadcast %c0_i32_201 : i32 to vector<16x32xi32>
    %513 = arith.shrui %511, %512 : vector<16x32xi32>
    %c255_i32_202 = arith.constant 255 : i32
    %514 = vector.broadcast %c255_i32_202 : i32 to vector<16x32xi32>
    %515 = arith.andi %513, %514 : vector<16x32xi32>
    %c3_i32_203 = arith.constant 3 : i32
    %516 = vector.broadcast %c3_i32_203 : i32 to vector<16x32xi32>
    %517 = arith.cmpi ult, %515, %516 : vector<16x32xi32>
    %c1_i32_204 = arith.constant 1 : i32
    %c0_i32_205 = arith.constant 0 : i32
    %518 = vector.broadcast %c1_i32_204 : i32 to vector<16x32xi32>
    %519 = vector.broadcast %c0_i32_205 : i32 to vector<16x32xi32>
    %520 = arith.select %517, %518, %519 : vector<16x32xi1>, vector<16x32xi32>
    %521 = arith.xori %492, %520 : vector<16x32xi32>
    %c8_i32_206 = arith.constant 8 : i32
    %522 = vector.broadcast %c8_i32_206 : i32 to vector<16x32xi32>
    %523 = arith.shrui %511, %522 : vector<16x32xi32>
    %c255_i32_207 = arith.constant 255 : i32
    %524 = vector.broadcast %c255_i32_207 : i32 to vector<16x32xi32>
    %525 = arith.andi %523, %524 : vector<16x32xi32>
    %c3_i32_208 = arith.constant 3 : i32
    %526 = vector.broadcast %c3_i32_208 : i32 to vector<16x32xi32>
    %527 = arith.cmpi ult, %525, %526 : vector<16x32xi32>
    %c2_i32_209 = arith.constant 2 : i32
    %c0_i32_210 = arith.constant 0 : i32
    %528 = vector.broadcast %c2_i32_209 : i32 to vector<16x32xi32>
    %529 = vector.broadcast %c0_i32_210 : i32 to vector<16x32xi32>
    %530 = arith.select %527, %528, %529 : vector<16x32xi1>, vector<16x32xi32>
    %531 = arith.xori %521, %530 : vector<16x32xi32>
    %c16_i32_211 = arith.constant 16 : i32
    %532 = vector.broadcast %c16_i32_211 : i32 to vector<16x32xi32>
    %533 = arith.shrui %511, %532 : vector<16x32xi32>
    %c255_i32_212 = arith.constant 255 : i32
    %534 = vector.broadcast %c255_i32_212 : i32 to vector<16x32xi32>
    %535 = arith.andi %533, %534 : vector<16x32xi32>
    %c3_i32_213 = arith.constant 3 : i32
    %536 = vector.broadcast %c3_i32_213 : i32 to vector<16x32xi32>
    %537 = arith.cmpi ult, %535, %536 : vector<16x32xi32>
    %c4_i32_214 = arith.constant 4 : i32
    %c0_i32_215 = arith.constant 0 : i32
    %538 = vector.broadcast %c4_i32_214 : i32 to vector<16x32xi32>
    %539 = vector.broadcast %c0_i32_215 : i32 to vector<16x32xi32>
    %540 = arith.select %537, %538, %539 : vector<16x32xi1>, vector<16x32xi32>
    %541 = arith.xori %531, %540 : vector<16x32xi32>
    %c24_i32_216 = arith.constant 24 : i32
    %542 = vector.broadcast %c24_i32_216 : i32 to vector<16x32xi32>
    %543 = arith.shrui %511, %542 : vector<16x32xi32>
    %c255_i32_217 = arith.constant 255 : i32
    %544 = vector.broadcast %c255_i32_217 : i32 to vector<16x32xi32>
    %545 = arith.andi %543, %544 : vector<16x32xi32>
    %c3_i32_218 = arith.constant 3 : i32
    %546 = vector.broadcast %c3_i32_218 : i32 to vector<16x32xi32>
    %547 = arith.cmpi ult, %545, %546 : vector<16x32xi32>
    %c8_i32_219 = arith.constant 8 : i32
    %c0_i32_220 = arith.constant 0 : i32
    %548 = vector.broadcast %c8_i32_219 : i32 to vector<16x32xi32>
    %549 = vector.broadcast %c0_i32_220 : i32 to vector<16x32xi32>
    %550 = arith.select %547, %548, %549 : vector<16x32xi1>, vector<16x32xi32>
    %551 = arith.xori %541, %550 : vector<16x32xi32>
    %c-1640531527_i32_221 = arith.constant -1640531527 : i32
    %552 = arith.muli %3, %c-1640531527_i32_221 : i32
    %553 = vector.broadcast %552 : i32 to vector<16x32xi32>
    %554 = arith.xori %11, %553 : vector<16x32xi32>
    %c8_i32_222 = arith.constant 8 : i32
    %c-2048144789_i32_223 = arith.constant -2048144789 : i32
    %555 = arith.muli %c8_i32_222, %c-2048144789_i32_223 : i32
    %556 = vector.broadcast %555 : i32 to vector<16x32xi32>
    %557 = arith.xori %554, %556 : vector<16x32xi32>
    %c16_i32_224 = arith.constant 16 : i32
    %558 = vector.broadcast %c16_i32_224 : i32 to vector<16x32xi32>
    %559 = arith.shrui %557, %558 : vector<16x32xi32>
    %560 = arith.xori %557, %559 : vector<16x32xi32>
    %c2146121005_i32_225 = arith.constant 2146121005 : i32
    %561 = vector.broadcast %c2146121005_i32_225 : i32 to vector<16x32xi32>
    %562 = arith.muli %560, %561 : vector<16x32xi32>
    %c15_i32_226 = arith.constant 15 : i32
    %563 = vector.broadcast %c15_i32_226 : i32 to vector<16x32xi32>
    %564 = arith.shrui %562, %563 : vector<16x32xi32>
    %565 = arith.xori %562, %564 : vector<16x32xi32>
    %c-2073254261_i32_227 = arith.constant -2073254261 : i32
    %566 = vector.broadcast %c-2073254261_i32_227 : i32 to vector<16x32xi32>
    %567 = arith.muli %565, %566 : vector<16x32xi32>
    %c16_i32_228 = arith.constant 16 : i32
    %568 = vector.broadcast %c16_i32_228 : i32 to vector<16x32xi32>
    %569 = arith.shrui %567, %568 : vector<16x32xi32>
    %570 = arith.xori %567, %569 : vector<16x32xi32>
    %c0_i32_229 = arith.constant 0 : i32
    %571 = vector.broadcast %c0_i32_229 : i32 to vector<16x32xi32>
    %572 = arith.shrui %570, %571 : vector<16x32xi32>
    %c255_i32_230 = arith.constant 255 : i32
    %573 = vector.broadcast %c255_i32_230 : i32 to vector<16x32xi32>
    %574 = arith.andi %572, %573 : vector<16x32xi32>
    %c3_i32_231 = arith.constant 3 : i32
    %575 = vector.broadcast %c3_i32_231 : i32 to vector<16x32xi32>
    %576 = arith.cmpi ult, %574, %575 : vector<16x32xi32>
    %c16_i32_232 = arith.constant 16 : i32
    %c0_i32_233 = arith.constant 0 : i32
    %577 = vector.broadcast %c16_i32_232 : i32 to vector<16x32xi32>
    %578 = vector.broadcast %c0_i32_233 : i32 to vector<16x32xi32>
    %579 = arith.select %576, %577, %578 : vector<16x32xi1>, vector<16x32xi32>
    %580 = arith.xori %551, %579 : vector<16x32xi32>
    %c8_i32_234 = arith.constant 8 : i32
    %581 = vector.broadcast %c8_i32_234 : i32 to vector<16x32xi32>
    %582 = arith.shrui %570, %581 : vector<16x32xi32>
    %c255_i32_235 = arith.constant 255 : i32
    %583 = vector.broadcast %c255_i32_235 : i32 to vector<16x32xi32>
    %584 = arith.andi %582, %583 : vector<16x32xi32>
    %c3_i32_236 = arith.constant 3 : i32
    %585 = vector.broadcast %c3_i32_236 : i32 to vector<16x32xi32>
    %586 = arith.cmpi ult, %584, %585 : vector<16x32xi32>
    %c32_i32_237 = arith.constant 32 : i32
    %c0_i32_238 = arith.constant 0 : i32
    %587 = vector.broadcast %c32_i32_237 : i32 to vector<16x32xi32>
    %588 = vector.broadcast %c0_i32_238 : i32 to vector<16x32xi32>
    %589 = arith.select %586, %587, %588 : vector<16x32xi1>, vector<16x32xi32>
    %590 = arith.xori %580, %589 : vector<16x32xi32>
    %c16_i32_239 = arith.constant 16 : i32
    %591 = vector.broadcast %c16_i32_239 : i32 to vector<16x32xi32>
    %592 = arith.shrui %570, %591 : vector<16x32xi32>
    %c255_i32_240 = arith.constant 255 : i32
    %593 = vector.broadcast %c255_i32_240 : i32 to vector<16x32xi32>
    %594 = arith.andi %592, %593 : vector<16x32xi32>
    %c3_i32_241 = arith.constant 3 : i32
    %595 = vector.broadcast %c3_i32_241 : i32 to vector<16x32xi32>
    %596 = arith.cmpi ult, %594, %595 : vector<16x32xi32>
    %c64_i32_242 = arith.constant 64 : i32
    %c0_i32_243 = arith.constant 0 : i32
    %597 = vector.broadcast %c64_i32_242 : i32 to vector<16x32xi32>
    %598 = vector.broadcast %c0_i32_243 : i32 to vector<16x32xi32>
    %599 = arith.select %596, %597, %598 : vector<16x32xi1>, vector<16x32xi32>
    %600 = arith.xori %590, %599 : vector<16x32xi32>
    %c24_i32_244 = arith.constant 24 : i32
    %601 = vector.broadcast %c24_i32_244 : i32 to vector<16x32xi32>
    %602 = arith.shrui %570, %601 : vector<16x32xi32>
    %c255_i32_245 = arith.constant 255 : i32
    %603 = vector.broadcast %c255_i32_245 : i32 to vector<16x32xi32>
    %604 = arith.andi %602, %603 : vector<16x32xi32>
    %c3_i32_246 = arith.constant 3 : i32
    %605 = vector.broadcast %c3_i32_246 : i32 to vector<16x32xi32>
    %606 = arith.cmpi ult, %604, %605 : vector<16x32xi32>
    %c128_i32_247 = arith.constant 128 : i32
    %c0_i32_248 = arith.constant 0 : i32
    %607 = vector.broadcast %c128_i32_247 : i32 to vector<16x32xi32>
    %608 = vector.broadcast %c0_i32_248 : i32 to vector<16x32xi32>
    %609 = arith.select %606, %607, %608 : vector<16x32xi1>, vector<16x32xi32>
    %610 = arith.xori %600, %609 : vector<16x32xi32>
    %c24_i32_249 = arith.constant 24 : i32
    %611 = vector.broadcast %c24_i32_249 : i32 to vector<16x32xi32>
    %612 = arith.shli %610, %611 : vector<16x32xi32>
    %c24_i32_250 = arith.constant 24 : i32
    %613 = vector.broadcast %c24_i32_250 : i32 to vector<16x32xi32>
    %614 = arith.shrsi %612, %613 : vector<16x32xi32>
    %615 = arith.sitofp %614 : vector<16x32xi32> to vector<16x32xf32>
    %616 = vector.broadcast %478 : vector<16x1xf32> to vector<16x32xf32>
    %617 = arith.mulf %615, %616 : vector<16x32xf32>
    %c0_251 = arith.constant 0 : index
    %c0_252 = arith.constant 0 : index
    %618 = vector.load %arg5[%c0_251, %c0_252] : memref<16x32xf32, #tpu.memory_space<vmem>>, vector<16x32xf32>
    tpu.vector_store %arg5[%c0_251, %c0_252], %617 {strides = array<i32>} : memref<16x32xf32, #tpu.memory_space<vmem>>, vector<16x32xf32>,
    return
  }
  func.func @transform_0(%arg0: i32) -> i32 {
    %c0_i32 = arith.constant 0 : i32
    %c0_i32_0 = arith.constant 0 : i32
    return %c0_i32 : i32
  }
  func.func @transform_1(%arg0: i32) -> (i32, i32) {
    %c0_i32 = arith.constant 0 : i32
    %c0_i32_0 = arith.constant 0 : i32
    return %arg0, %c0_i32 : i32, i32
  }
  func.func @transform_2(%arg0: i32) -> (i32, i32) {
    %c0_i32 = arith.constant 0 : i32
    %c0_i32_0 = arith.constant 0 : i32
    %c0_i32_1 = arith.constant 0 : i32
    return %c0_i32, %c0_i32_0 : i32, i32
  }
  func.func @transform_3(%arg0: i32) -> (i32, i32) {
    %c0_i32 = arith.constant 0 : i32
    %c0_i32_0 = arith.constant 0 : i32
    %c0_i32_1 = arith.constant 0 : i32
    return %c0_i32, %c0_i32_0 : i32, i32
  }
  func.func @transform_4(%arg0: i32) -> (i32, i32) {
    %c0_i32 = arith.constant 0 : i32
    %c0_i32_0 = arith.constant 0 : i32
    return %arg0, %c0_i32 : i32, i32
  }
}

</mosaic_0001>

<bundles_post_ra>
// kernel: tpu_custom_call.1
= control target key start
LH: loop header
LB: loop body
LE: loop exit
PB: predicated region body
PF: predicated region fallthrough
CT: control target
= control target key end

     0   :  { %10 = vsyncpa [#allocation4], 0  ;;  %s1208_s0 = inlined_call_operand.<no memory space> [shape: s32[1], index: 0, kind: input, shape index: {}]   ;;  %s1209_s1 = inlined_call_operand.hbm [shape: f32[16,32], index: 1, kind: input, shape index: {}]   ;;  %s1210_s2 = inlined_call_operand.vmem [shape: f32[1,32], index: 2, kind: input, shape index: {}]   ;;  %s1211_s3 = inlined_call_operand.vmem [shape: f32[1,32], index: 3, kind: input, shape index: {}]   ;;  %s1212_s4 = inlined_call_operand.hbm [shape: f32[16,32], index: 4, kind: output, shape index: {}]  }
   0x1   :  { %11 = vsyncpa [#allocation5], 0  ;;  %s869_s15 = smov [#allocation3]   ;;  %s821_s19 = scalar_lea.hbm %s1209_s1, 256 }
   0x2   :  { %s19_s16 = sshll.u32 %s869_s15, 4  ;;  %p822_p0 = scmp.ne.s32.totalorder %s1209_s1, %s821_s19  ;;  %s20_s16 = int_to_ptr.vmem [resolvable:$true] %s19_s16 }
   0x3   :  { %p825_p1 = scmp.lt.u32.totalorder %s821_s19, %s1209_s1 }
   0x5   :  { %p827_p2 = pnand %p825_p1, %p822_p0 }
   0x7   :  { %830 = shalt.err (!%p827_p2)
}
   0x8   :  { %s831_s24 = scalar_lea.vmem %s20_s16, 256  ;;  %p836_p4 = scmp.lt.s32.totalorder %s20_s16, %s20_s16 }
   0x9   :  { %p832_p3 = scmp.ne.s32.totalorder %s20_s16, %s831_s24  ;;  %p837_p5 = scmp.lt.s32.totalorder %s831_s24, %s831_s24 }
   0xb   :  { %p838_p6 = por %p837_p5, %p836_p4 }
   0xd   :  { %p839_p7 = pnand %p838_p6, %p832_p3 }
   0xf   :  { %842 = shalt.err (!%p839_p7)
}
  0x10   :  { %s870_s25 = smov 128   ;;  %s871_s26 = smov 8  }
  0x11   :  { %25 = dma.hbm_to_vmem [thread:$0]  %s1209_s1, 256, %s20_s16, [#allocation4], %s870_s25, %s870_s25, %s871_s26  }
  0x12   :  { %865 = dma.done.wait [#allocation4], 256  }
  0x13   :  { %866 = vsyncadd [#allocation4], 4294967040  ;;  %vm51_vm0 = vcmask 261120   ;;  %v33_v0 = vld [vmem:[#allocation3] sm:$0xff]  ;;  %v34_v1 = vld [vmem:[#allocation3 + $0x8] sm:$0xff]  ;;  %v39_v14 = vlaneseq }
  0x14   :  { %v52_v2 = vsel %vm51_vm0, %v33_v0, 0.0  ;;  %v55_v3 = vsel %vm51_vm0, %v34_v1, 0.0  ;;  %s121_s30 = smul.u32 2654435769, %s1208_s0 }
  0x15   :  { %53 = vadd.xlane.f32.xlu0 %v52_v2  ;;  %v40_v15 = vshrl.u32 %v39_v14, 7  ;;  %v46_v17 = vand.u32 127, %v39_v14 }
  0x16   :  { %v122_v21 = vstv %s121_s30 }
  0x17   :  { %v41_v16 = vadd.s32 8, %v40_v15  ;;  %v47_v18 = vmul.u32 32, %v40_v15 }
  0x19   :  { %56 = vadd.xlane.f32.xlu0 %v55_v3  ;;  %v48_v19 = vmul.u32 32, %v41_v16  ;;  %v49_v20 = vadd.s32 %v47_v18, %v46_v17 }
  0x1b   :  { %v50_v22 = vadd.s32 %v48_v19, %v46_v17  ;;  %v927_v23 = vxor.u32 %v122_v21, %v49_v20 }
  0x1d   :  { %v929_v24 = vxor.u32 %v122_v21, %v50_v22  ;;  %v125_v25 = vxor.u32 2246822507, %v927_v23  ;;  %v181_v28 = vxor.u32 198677718, %v927_v23 }
  0x1f   :  { %v126_v26 = vxor.u32 2246822507, %v929_v24  ;;  %v127_v27 = vshrl.u32 %v125_v25, 16  ;;  %v183_v31 = vshrl.u32 %v181_v28, 16  ;;  %v182_v34 = vxor.u32 198677718, %v929_v24 }
  0x21   :  { %v128_v29 = vshrl.u32 %v126_v26, 16  ;;  %v129_v30 = vxor.u32 %v127_v27, %v125_v25  ;;  %v185_v35 = vxor.u32 %v183_v31, %v181_v28  ;;  %v184_v38 = vshrl.u32 %v182_v34, 16 }
  0x22   :  { %v872_v27 = vmov 0  }
  0x23   :  { %v130_v32 = vxor.u32 %v128_v29, %v126_v26  ;;  %v131_v33 = vmul.u32 2146121005, %v129_v30  ;;  %v187_v39 = vmul.u32 2146121005, %v185_v35  ;;  %v186_v42 = vxor.u32 %v184_v38, %v182_v34 }
  0x25   :  { %v132_v36 = vmul.u32 2146121005, %v130_v32  ;;  %v133_v37 = vshrl.u32 %v131_v33, 15  ;;  %v189_v44 = vshrl.u32 %v187_v39, 15  ;;  %v188_v48 = vmul.u32 2146121005, %v186_v42 }
  0x27   :  { %v134_v40 = vshrl.u32 %v132_v36, 15  ;;  %v135_v41 = vxor.u32 %v133_v37, %v131_v33  ;;  %v191_v50 = vxor.u32 %v189_v44, %v187_v39  ;;  %v190_v54 = vshrl.u32 %v188_v48, 15 }
  0x29   :  { %v136_v46 = vxor.u32 %v134_v40, %v132_v36  ;;  %v137_v47 = vmul.u32 2221713035, %v135_v41  ;;  %v193_v55 = vmul.u32 2221713035, %v191_v50  ;;  %v192_v58 = vxor.u32 %v190_v54, %v188_v48 }
  0x2b   :  { %v138_v51 = vmul.u32 2221713035, %v136_v46  ;;  %v139_v53 = vshrl.u32 %v137_v47, 16  ;;  %v195_v60 = vshrl.u32 %v193_v55, 16 }
  0x2d   :  { %v140_v56 = vshrl.u32 %v138_v51, 16  ;;  %v141_v57 = vxor.u32 %v139_v53, %v137_v47 }
  0x2f   :  { %v142_v61 = vxor.u32 %v140_v56, %v138_v51  ;;  %v151_v62 = vshrl.u32 %v141_v57, 8  ;;  %v161_v2 = vshrl.u32 %v141_v57, 16 }
  0x31   :  { %v162_v14 = vshrl.u32 %v142_v61, 16  ;;  %v163_v15 = vand.u32 255, %v161_v2  ;;  %v144_v17 = vand.u32 255, %v142_v61  ;;  %v733_v38 = vshrl.u32 %v142_v61, 24 }
  0x33   :  { %v164_v31 = vand.u32 255, %v162_v14  ;;  %vm165_vm4 = vcmp.lt.u32.totalorder %v163_v15, 3  ;;  %vm146_vm5 = vcmp.lt.u32.totalorder %v144_v17, 3  ;;  %vm176_vm10 = vcmp.lt.u32.totalorder %v733_v38, 3 }
  0x34   :  { %v167_v41 = vsel %vm165_vm4, 4, %v872_v27  ;;  %v148_v44 = vsel %vm146_vm5, 1, %v872_v27 }
  0x35   :  { %vm166_vm8 = vcmp.lt.u32.totalorder %v164_v31, 3 }
  0xa2   :  { %v54_v4 = vpop.xlane.xlu0 %53 }
  0xa3   :  { %v59_v5 = vmul.f32 0.03125, %v54_v4 }
  0xa5   :  { %v916_v6 = vsub.f32 %v33_v0, %v59_v5  ;;  %v194_v0 = vmul.u32 2221713035, %v192_v58  ;;  %v197_v5 = vxor.u32 %v195_v60, %v193_v55 }
  0xa6   :  { %v57_v7 = vpop.xlane.xlu0 %56 }
  0xa7   :  { %v60_v8 = vmul.f32 0.03125, %v57_v7  ;;  %v93_v9 = vand.u32 2147483647, %v916_v6  ;;  %v152_v7 = vshrl.u32 %v142_v61, 8  ;;  %v199_v19 = vand.u32 255, %v197_v5 }
  0xa8   :  { %v207_v20 = vshrl.u32 %v197_v5, 8  ;;  %v217_v30 = vshrl.u32 %v197_v5, 16  ;;  %v734_v53 = vshrl.u32 %v197_v5, 24 }
  0xa9   :  { %v919_v10 = vsub.f32 %v34_v1, %v60_v8  ;;  %v95_v11 = vsel %vm51_vm0, %v93_v9, -inf  ;;  %v143_v1 = vand.u32 255, %v141_v57  ;;  %v153_v8 = vand.u32 255, %v151_v62 }
  0xaa   :  { %96 = vmax.xlane.f32.xlu1 %v95_v11  ;;  %v196_v11 = vshrl.u32 %v194_v0, 16  ;;  %v154_v21 = vand.u32 255, %v152_v7  ;;  %vm953_vm6 = vcmp.lt.u32.totalorder %v199_v19, 3  ;;  %v209_v36 = vand.u32 255, %v207_v20 }
  0xab   :  { %v94_v12 = vand.u32 2147483647, %v919_v10  ;;  %vm145_vm1 = vcmp.lt.u32.totalorder %v143_v1, 3  ;;  %vm155_vm2 = vcmp.lt.u32.totalorder %v153_v8, 3  ;;  %v219_v42 = vand.u32 255, %v217_v30 }
  0xac   :  { %v198_v25 = vxor.u32 %v196_v11, %v194_v0  ;;  %v147_v28 = vsel %vm145_vm1, 1, %v872_v27  ;;  %v157_v34 = vsel %vm155_vm2, 2, %v872_v27  ;;  %vm156_vm7 = vcmp.lt.u32.totalorder %v154_v21, 3 }
  0xad   :  { %v98_v13 = vsel %vm51_vm0, %v94_v12, -inf  ;;  %vm211_vm9 = vcmp.lt.u32.totalorder %v209_v36, 3  ;;  %v158_v54 = vsel %vm156_vm7, 2, %v872_v27  ;;  %v203_v58 = vsel %vm953_vm6, 16, %v872_v27 }
  0xae   :  { %99 = vmax.xlane.f32.xlu1 %v98_v13  ;;  %v732_v13 = vshrl.u32 %v141_v57, 24  ;;  %v208_v39 = vshrl.u32 %v198_v25, 8  ;;  %v200_v47 = vand.u32 255, %v198_v25  ;;  %v218_v48 = vshrl.u32 %v198_v25, 16 }
  0xaf   :  { %vm221_vm11 = vcmp.lt.u32.totalorder %v219_v42, 3  ;;  %vm231_vm13 = vcmp.lt.u32.totalorder %v734_v53, 3  ;;  %v178_v0 = vsel %vm176_vm10, 8, %v872_v27  ;;  %v735_v2 = vshrl.u32 %v198_v25, 24 }
  0xb0   :  { %vm948_vm3 = vcmp.lt.u32.totalorder %v732_v13, 3  ;;  %v210_v56 = vand.u32 255, %v208_v39  ;;  %vm202_vm12 = vcmp.lt.u32.totalorder %v200_v47, 3  ;;  %v220_v61 = vand.u32 255, %v218_v48 }
  0xb1   :  { %v177_v51 = vsel %vm948_vm3, 8, %v872_v27  ;;  %v204_v5 = vsel %vm202_vm12, 16, %v872_v27  ;;  %vm232_vm1 = vcmp.lt.u32.totalorder %v735_v2, 3  ;;  %v282_v42 = vxor.u32 2445500225, %v929_v24 }
  0xb2   :  { %vm212_vm14 = vcmp.lt.u32.totalorder %v210_v56, 3  ;;  %vm222_vm15 = vcmp.lt.u32.totalorder %v220_v61, 3  ;;  %v234_v17 = vsel %vm232_vm1, 128, %v872_v27 }
  0xb3   :  { %v214_v11 = vsel %vm212_vm14, 32, %v872_v27  ;;  %v224_v14 = vsel %vm222_vm15, 64, %v872_v27  ;;  %v284_v47 = vshrl.u32 %v282_v42, 16 }
 0x137   :  { %v935_v43 = vpop.xlane.xlu1 %96 }
 0x138   :  { %v101_v45 = vmax.f32 %v935_v43, 1e-08 }
 0x13a   :  { %797 = vrcp.f32 %v101_v45 }
 0x13b   :  { %v940_v49 = vpop.xlane.xlu1 %99 }
 0x13c   :  { %v102_v52 = vmax.f32 %v940_v49, 1e-08 }
 0x13e   :  { %799 = vrcp.f32 %v102_v52  ;;  %v104_v31 = vmul.f32 0.007874016, %v102_v52  ;;  %v64_v52 = vmul.f32 %v919_v10, %v919_v10 }
 0x140   :  { %v68_v39 = vsel %vm51_vm0, %v64_v52, 0.0 }
 0x144   :  { %v798_v59 = vpop.eup %797 }
 0x145   :  { %v106_v63 = vmul.f32 127.0, %v798_v59  ;;  %v168_v59 = vsel %vm166_vm8, 4, %v872_v27 }
 0x147   :  { %v109_v3 = vmul.f32 %v106_v63, %v916_v6  ;;  %v213_v63 = vsel %vm211_vm9, 32, %v872_v27 }
 0x148   :  { %v800_v4 = vpop.eup %799 }
 0x149   :  { %v726_v9 = vmax.f32 %v109_v3, -128.0  ;;  %v108_v12 = vmul.f32 127.0, %v800_v4  ;;  %v223_v4 = vsel %vm221_vm11, 64, %v872_v27 }
 0x14b   :  { %v727_v16 = vmin.f32 %v726_v9, 127.0  ;;  %v110_v18 = vmul.f32 %v108_v12, %v919_v10  ;;  %v233_v9 = vsel %vm231_vm13, 128, %v872_v27  ;;  %v286_v10 = vxor.u32 %v284_v47, %v282_v42 }
 0x14d   :  { %v770_v22 = vcvt.f32.s32 %v727_v16  ;;  %v729_v26 = vmax.f32 %v110_v18, -128.0  ;;  %v288_v56 = vmul.u32 2146121005, %v286_v10 }
 0x14f   :  { %v119_v32 = vand.u32 255, %v770_v22  ;;  %v730_v33 = vmin.f32 %v729_v26, 127.0  ;;  %v103_v22 = vmul.f32 0.007874016, %v101_v45  ;;  %v63_v45 = vmul.f32 %v916_v6, %v916_v6 }
 0x151   :  { %v149_v37 = vxor.u32 %v147_v28, %v119_v32  ;;  %v773_v40 = vcvt.f32.s32 %v730_v33  ;;  %v736_v28 = vld [vmem:[%s1210_s2] ss:$0 sm:$0xff]  ;;  %v65_v38 = vsel %vm51_vm0, %v63_v45, 0.0 }
 0x153   :  { %v159_v46 = vxor.u32 %v157_v34, %v149_v37  ;;  %v120_v50 = vand.u32 255, %v773_v40  ;;  %v281_v40 = vxor.u32 2445500225, %v927_v23 }
 0x155   :  { %v169_v55 = vxor.u32 %v167_v41, %v159_v46  ;;  %v150_v57 = vxor.u32 %v148_v44, %v120_v50  ;;  %v283_v6 = vshrl.u32 %v281_v40, 16  ;;  %v337_v41 = vxor.u32 397355436, %v927_v23 }
 0x157   :  { %v179_v60 = vxor.u32 %v177_v51, %v169_v55  ;;  %v160_v62 = vxor.u32 %v158_v54, %v150_v57  ;;  %v285_v44 = vxor.u32 %v283_v6, %v281_v40  ;;  %v339_v46 = vshrl.u32 %v337_v41, 16 }
 0x158   :  { %v338_v51 = vxor.u32 397355436, %v929_v24 }
 0x159   :  { %v205_v1 = vxor.u32 %v203_v58, %v179_v60  ;;  %v170_v3 = vxor.u32 %v168_v59, %v160_v62  ;;  %v287_v48 = vmul.u32 2146121005, %v285_v44  ;;  %v341_v50 = vxor.u32 %v339_v46, %v337_v41 }
 0x15a   :  { %v340_v55 = vshrl.u32 %v338_v51, 16  ;;  %v290_v60 = vshrl.u32 %v288_v56, 15 }
 0x15b   :  { %v215_v7 = vxor.u32 %v213_v63, %v205_v1  ;;  %v180_v8 = vxor.u32 %v178_v0, %v170_v3  ;;  %v289_v53 = vshrl.u32 %v287_v48, 15  ;;  %v343_v54 = vmul.u32 2146121005, %v341_v50 }
 0x15c   :  { %v342_v59 = vxor.u32 %v340_v55, %v338_v51  ;;  %v292_v2 = vxor.u32 %v290_v60, %v288_v56 }
 0x15d   :  { %v225_v12 = vxor.u32 %v223_v4, %v215_v7  ;;  %v206_v13 = vxor.u32 %v204_v5, %v180_v8  ;;  %v291_v57 = vxor.u32 %v289_v53, %v287_v48  ;;  %v345_v58 = vshrl.u32 %v343_v54, 15 }
 0x15e   :  { %v344_v1 = vmul.u32 2146121005, %v342_v59 }
 0x15f   :  { %v235_v15 = vxor.u32 %v233_v9, %v225_v12  ;;  %v216_v16 = vxor.u32 %v214_v11, %v206_v13  ;;  %v293_v61 = vmul.u32 2221713035, %v291_v57  ;;  %v347_v62 = vxor.u32 %v345_v58, %v343_v54 }
 0x160   :  { %v346_v7 = vshrl.u32 %v344_v1, 15  ;;  %v294_v11 = vmul.u32 2221713035, %v292_v2 }
 0x161   :  { %v237_v18 = vshll.u32 %v235_v15, 24  ;;  %v226_v19 = vxor.u32 %v224_v14, %v216_v16  ;;  %v295_v3 = vshrl.u32 %v293_v61, 16  ;;  %v349_v4 = vmul.u32 2221713035, %v347_v62 }
 0x162   :  { %v348_v15 = vxor.u32 %v346_v7, %v344_v1 }
 0x163   :  { %v239_v20 = vshra.s32 %v237_v18, 24  ;;  %v236_v21 = vxor.u32 %v234_v17, %v226_v19  ;;  %v297_v12 = vxor.u32 %v295_v3, %v293_v61  ;;  %v351_v13 = vshrl.u32 %v349_v4, 16 }
 0x164   :  { %v296_v17 = vshrl.u32 %v294_v11, 16 }
 0x165   :  { %v241_v25 = vcvt.s32.f32 %v239_v20  ;;  %v238_v26 = vshll.u32 %v236_v21, 24  ;;  %v307_v18 = vshrl.u32 %v297_v12, 8  ;;  %v353_v19 = vxor.u32 %v351_v13, %v349_v4 }
 0x167   :  { %v243_v29 = vmul.f32 %v241_v25, %v103_v22  ;;  %v240_v30 = vshra.s32 %v238_v26, 24  ;;  %v299_v22 = vand.u32 255, %v297_v12  ;;  %v350_v25 = vmul.u32 2221713035, %v348_v15 }
 0x168   :  { %v317_v26 = vshrl.u32 %v297_v12, 16  ;;  %v745_v48 = vshrl.u32 %v353_v19, 24 }
 0x169   :  { %v242_v32 = vcvt.s32.f32 %v240_v30  ;;  %v983_v33 = vmul.f32 %v736_v28, %v243_v29  ;;  %v298_v29 = vxor.u32 %v296_v17, %v294_v11  ;;  %v309_v30 = vand.u32 255, %v307_v18 }
 0x16a   :  { %vm301_vm2 = vcmp.lt.u32.totalorder %v299_v22, 3  ;;  %v352_v45 = vshrl.u32 %v350_v25, 16  ;;  %vm1041_vm9 = vcmp.lt.u32.totalorder %v745_v48, 3 }
 0x16b   :  { %v244_v34 = vmul.f32 %v242_v32, %v104_v31  ;;  %v253_v35 = vand.u32 2147483647, %v983_v33  ;;  %v743_v31 = vshrl.u32 %v297_v12, 24  ;;  %v355_v32 = vand.u32 255, %v353_v19 }
 0x16c   :  { %vm311_vm3 = vcmp.lt.u32.totalorder %v309_v30, 3  ;;  %v300_v41 = vand.u32 255, %v298_v29  ;;  %v318_v42 = vshrl.u32 %v298_v29, 16  ;;  %v303_v46 = vsel %vm301_vm2, 1, %v872_v27 }
 0x16d   :  { %v255_v43 = vsel %vm51_vm0, %v253_v35, -inf  ;;  %v989_v36 = vmul.f32 %v736_v28, %v244_v34  ;;  %vm1018_vm4 = vcmp.lt.u32.totalorder %v743_v31, 3  ;;  %vm1022_vm5 = vcmp.lt.u32.totalorder %v355_v32, 3 }
 0x16e   :  { %256 = vmax.xlane.f32.xlu0 %v255_v43  ;;  %v363_v43 = vshrl.u32 %v353_v19, 8  ;;  %v1028_v50 = vxor.u32 %v352_v45, %v350_v25  ;;  %v313_v55 = vsel %vm311_vm3, 2, %v872_v27  ;;  %v333_v56 = vsel %vm1018_vm4, 8, %v872_v27 }
 0x16f   :  { %v254_v37 = vand.u32 2147483647, %v989_v36  ;;  %vm302_vm7 = vcmp.lt.u32.totalorder %v300_v41, 3  ;;  %v320_v59 = vand.u32 255, %v318_v42  ;;  %v744_v7 = vshrl.u32 %v298_v29, 24 }
 0x170   :  { %v365_v47 = vand.u32 255, %v363_v43  ;;  %v364_v62 = vshrl.u32 %v1028_v50, 8  ;;  %v304_v11 = vsel %vm302_vm7, 1, %v872_v27  ;;  %v356_v12 = vand.u32 255, %v1028_v50 }
 0x171   :  { %v258_v49 = vsel %vm51_vm0, %v254_v37, -inf  ;;  %v319_v37 = vand.u32 255, %v317_v26  ;;  %v374_v13 = vshrl.u32 %v1028_v50, 16  ;;  %vm322_vm12 = vcmp.lt.u32.totalorder %v320_v59, 3 }
 0x172   :  { %66 = vadd.xlane.f32.xlu0 %v65_v38  ;;  %259 = vmax.xlane.f32.xlu1 %v258_v49  ;;  %v308_v49 = vshrl.u32 %v298_v29, 8  ;;  %vm367_vm8 = vcmp.lt.u32.totalorder %v365_v47, 3  ;;  %v366_v18 = vand.u32 255, %v364_v62  ;;  %vm332_vm14 = vcmp.lt.u32.totalorder %v744_v7, 3 }
 0x173   :  { %vm321_vm6 = vcmp.lt.u32.totalorder %v319_v37, 3  ;;  %vm1054_vm15 = vcmp.lt.u32.totalorder %v356_v12, 3  ;;  %v376_v30 = vand.u32 255, %v374_v13  ;;  %v334_v43 = vsel %vm332_vm14, 8, %v872_v27 }
 0x174   :  { %v310_v53 = vand.u32 255, %v308_v49  ;;  %v323_v61 = vsel %vm321_vm6, 4, %v872_v27  ;;  %vm368_vm3 = vcmp.lt.u32.totalorder %v366_v18, 3  ;;  %v389_v42 = vsel %vm1041_vm9, 128, %v872_v27 }
 0x175   :  { %v431_v12 = vxor.u32 2644177943, %v927_v23  ;;  %v487_v13 = vxor.u32 596033154, %v927_v23 }
 0x176   :  { %69 = vadd.xlane.f32.xlu1 %v68_v39  ;;  %vm312_vm10 = vcmp.lt.u32.totalorder %v310_v53, 3  ;;  %v360_v39 = vsel %vm1054_vm15, 16, %v872_v27 }
 0x177   :  { %v314_v17 = vsel %vm312_vm10, 2, %v872_v27 }
 0x1fb   :  { %v1001_v63 = vpop.xlane.xlu0 %256 }
 0x1fc   :  { %v261_v0 = vmax.f32 %v1001_v63, 1e-08 }
 0x1fe   :  { %801 = vrcp.f32 %v261_v0 }
 0x1ff   :  { %v1006_v5 = vpop.xlane.xlu1 %259  ;;  %v67_v9 = vpop.xlane.xlu0 %66 }
 0x200   :  { %v262_v8 = vmax.f32 %v1006_v5, 1e-08  ;;  %v1011_v14 = vmul.f32 0.032258064, %v67_v9  ;;  %v432_v5 = vxor.u32 2644177943, %v929_v24 }
 0x202   :  { %803 = vrcp.f32 %v262_v8  ;;  %vm75_vm13 = vcmp.eq.f32.partialorder %v1011_v14, inf  ;;  %v78_v26 = vand.u32 2147483648, %v1011_v14  ;;  %vm77_vm1 = vcmp.eq.f32.partialorder %v1011_v14, 0.0 }
 0x203   :  { %v70_v16 = vpop.xlane.xlu1 %69  ;;  %805 = vrsqrt.f32 %v1011_v14  ;;  %v264_v62 = vmul.f32 0.007874016, %v262_v8  ;;  %v433_v8 = vshrl.u32 %v431_v12, 16 }
 0x204   :  { %v1014_v20 = vmul.f32 0.032258064, %v70_v16 }
 0x206   :  { %807 = vrsqrt.f32 %v1014_v20  ;;  %vm82_vm2 = vcmp.eq.f32.partialorder %v1014_v20, inf  ;;  %vm84_vm4 = vcmp.eq.f32.partialorder %v1014_v20, 0.0 }
 0x208   :  { %v802_v21 = vpop.eup %801 }
 0x209   :  { %v266_v28 = vmul.f32 127.0, %v802_v21 }
 0x20b   :  { %v269_v34 = vmul.f32 %v266_v28, %v983_v33  ;;  %v373_v33 = vshrl.u32 %v353_v19, 16  ;;  %v324_v28 = vsel %vm322_vm12, 4, %v872_v27 }
 0x20c   :  { %v804_v35 = vpop.eup %803 }
 0x20d   :  { %v737_v38 = vmax.f32 %v269_v34, -128.0  ;;  %v268_v52 = vmul.f32 127.0, %v804_v35  ;;  %v806_v51 = vpop.eup %805  ;;  %v375_v57 = vand.u32 255, %v373_v33  ;;  %v369_v35 = vsel %vm367_vm8, 32, %v872_v27 }
 0x20e   :  { %v74_v1 = vmul.f32 %v806_v51, %v1011_v14 }
 0x20f   :  { %v738_v6 = vmin.f32 %v737_v38, 127.0  ;;  %v270_v44 = vmul.f32 %v268_v52, %v989_v36  ;;  %v359_v36 = vsel %vm1022_vm5, 16, %v872_v27  ;;  %vm377_vm11 = vcmp.lt.u32.totalorder %v375_v57, 3 }
 0x210   :  { %v808_v2 = vpop.eup %807  ;;  %v76_v21 = vsel %vm75_vm13, %v1011_v14, %v74_v1  ;;  %v746_v38 = vshrl.u32 %v1028_v50, 24  ;;  %v85_v52 = vand.u32 2147483648, %v1014_v20  ;;  %v379_v14 = vsel %vm377_vm11, 64, %v872_v27 }
 0x211   :  { %v776_v10 = vcvt.f32.s32 %v738_v6  ;;  %v740_v54 = vmax.f32 %v270_v44, -128.0  ;;  %v81_v19 = vmul.f32 %v808_v2, %v1014_v20  ;;  %v79_v34 = vsel %vm77_vm1, %v78_v26, %v76_v21 }
 0x212   :  { %v87_v40 = vadd.f32 1e-06, %v79_v34  ;;  %vm378_vm5 = vcmp.lt.u32.totalorder %v376_v30, 3  ;;  %v370_v44 = vsel %vm368_vm3, 32, %v872_v27  ;;  %vm388_vm6 = vcmp.lt.u32.totalorder %v746_v38, 3 }
 0x213   :  { %v279_v58 = vand.u32 255, %v776_v10  ;;  %v741_v60 = vmin.f32 %v740_v54, 127.0  ;;  %v83_v45 = vsel %vm82_vm2, %v1014_v20, %v81_v19  ;;  %v380_v48 = vsel %vm378_vm5, 64, %v872_v27 }
 0x214   :  { %v86_v41 = vsel %vm84_vm4, %v85_v52, %v83_v45  ;;  %809 = vrcp.f32 %v87_v40  ;;  %v390_v20 = vsel %vm388_vm6, 128, %v872_v27  ;;  %v488_v21 = vxor.u32 596033154, %v929_v24 }
 0x215   :  { %v305_v4 = vxor.u32 %v303_v46, %v279_v58  ;;  %v779_v9 = vcvt.f32.s32 %v741_v60  ;;  %v88_v50 = vadd.f32 1e-06, %v86_v41 }
 0x217   :  { %v315_v15 = vxor.u32 %v313_v55, %v305_v4  ;;  %v280_v16 = vand.u32 255, %v779_v9  ;;  %811 = vrcp.f32 %v88_v50 }
 0x219   :  { %v325_v22 = vxor.u32 %v323_v61, %v315_v15  ;;  %v306_v25 = vxor.u32 %v304_v11, %v280_v16  ;;  %v434_v15 = vshrl.u32 %v432_v5, 16  ;;  %v435_v16 = vxor.u32 %v433_v8, %v431_v12 }
 0x21b   :  { %v335_v31 = vxor.u32 %v333_v56, %v325_v22  ;;  %v316_v32 = vxor.u32 %v314_v17, %v306_v25  ;;  %v489_v17 = vshrl.u32 %v487_v13, 16  ;;  %v436_v18 = vxor.u32 %v434_v15, %v432_v5 }
 0x21c   :  { %v437_v19 = vmul.u32 2146121005, %v435_v16 }
 0x21d   :  { %v361_v37 = vxor.u32 %v359_v36, %v335_v31  ;;  %v326_v49 = vxor.u32 %v324_v28, %v316_v32  ;;  %v263_v36 = vmul.f32 0.007874016, %v261_v0  ;;  %v491_v22 = vxor.u32 %v489_v17, %v487_v13 }
 0x21e   :  { %v810_v61 = vpop.eup %809  ;;  %v438_v25 = vmul.u32 2146121005, %v436_v18  ;;  %v439_v26 = vshrl.u32 %v437_v19, 15  ;;  %v490_v28 = vshrl.u32 %v488_v21, 16 }
 0x21f   :  { %v371_v33 = vxor.u32 %v369_v35, %v361_v37  ;;  %v336_v6 = vxor.u32 %v334_v43, %v326_v49  ;;  %v493_v29 = vmul.u32 2146121005, %v491_v22 }
 0x220   :  { %v440_v30 = vshrl.u32 %v438_v25, 15  ;;  %v441_v31 = vxor.u32 %v439_v26, %v437_v19  ;;  %v492_v32 = vxor.u32 %v490_v28, %v488_v21 }
 0x221   :  { %v381_v46 = vxor.u32 %v379_v14, %v371_v33  ;;  %v362_v47 = vxor.u32 %v360_v39, %v336_v6  ;;  %v812_v7 = vpop.eup %811  ;;  %v495_v35 = vshrl.u32 %v493_v29, 15 }
 0x222   :  { %v442_v45 = vxor.u32 %v440_v30, %v438_v25  ;;  %v443_v37 = vmul.u32 2221713035, %v441_v31  ;;  %v494_v38 = vmul.u32 2146121005, %v492_v32 }
 0x223   :  { %v391_v51 = vxor.u32 %v389_v42, %v381_v46  ;;  %v372_v10 = vxor.u32 %v370_v44, %v362_v47  ;;  %v497_v52 = vxor.u32 %v495_v35, %v493_v29 }
 0x224   :  { %v444_v14 = vmul.u32 2221713035, %v442_v45  ;;  %v445_v40 = vshrl.u32 %v443_v37, 16  ;;  %v496_v33 = vshrl.u32 %v494_v38, 15 }
 0x225   :  { %v393_v53 = vshll.u32 %v391_v51, 24  ;;  %v382_v54 = vxor.u32 %v380_v48, %v372_v10  ;;  %v499_v6 = vmul.u32 2221713035, %v497_v52 }
 0x226   :  { %v446_v41 = vshrl.u32 %v444_v14, 16  ;;  %v447_v42 = vxor.u32 %v445_v40, %v443_v37  ;;  %v498_v44 = vxor.u32 %v496_v33, %v494_v38 }
 0x227   :  { %v395_v55 = vshra.s32 %v393_v53, 24  ;;  %v392_v56 = vxor.u32 %v390_v20, %v382_v54  ;;  %v501_v47 = vshrl.u32 %v499_v6, 16 }
 0x228   :  { %v448_v48 = vxor.u32 %v446_v41, %v444_v14  ;;  %v457_v50 = vshrl.u32 %v447_v42, 8  ;;  %v500_v10 = vmul.u32 2221713035, %v498_v44  ;;  %v449_v20 = vand.u32 255, %v447_v42 }
 0x229   :  { %v397_v57 = vcvt.s32.f32 %v395_v55  ;;  %v394_v58 = vshll.u32 %v392_v56, 24  ;;  %v467_v53 = vshrl.u32 %v447_v42, 16  ;;  %v503_v56 = vxor.u32 %v501_v47, %v499_v6 }
 0x22a   :  { %vm451_vm7 = vcmp.lt.u32.totalorder %v449_v20, 3  ;;  %v754_v25 = vshrl.u32 %v448_v48, 24 }
 0x22b   :  { %v399_v59 = vmul.f32 %v397_v57, %v263_v36  ;;  %v396_v60 = vshra.s32 %v394_v58, 24  ;;  %v458_v36 = vshrl.u32 %v448_v48, 8  ;;  %v459_v57 = vand.u32 255, %v457_v50 }
 0x22c   :  { %v453_v8 = vsel %vm451_vm7, 1, %v872_v27  ;;  %v523_v15 = vshrl.u32 %v503_v56, 16  ;;  %v755_v52 = vshrl.u32 %v503_v56, 24  ;;  %vm482_vm1 = vcmp.lt.u32.totalorder %v754_v25, 3 }
 0x22d   :  { %v398_v1 = vcvt.s32.f32 %v396_v60  ;;  %v401_v2 = vmul.f32 %v810_v61, %v399_v59  ;;  %v502_v59 = vshrl.u32 %v500_v10, 16  ;;  %v753_v61 = vshrl.u32 %v447_v42, 24 }
 0x22e   :  { %vm461_vm8 = vcmp.lt.u32.totalorder %v459_v57, 3  ;;  %v525_v30 = vand.u32 255, %v523_v15  ;;  %vm537_vm4 = vcmp.lt.u32.totalorder %v755_v52, 3  ;;  %v484_v50 = vsel %vm482_vm1, 8, %v872_v27 }
 0x22f   :  { %v400_v3 = vmul.f32 %v398_v1, %v264_v62  ;;  %v403_v4 = vand.u32 2147483647, %v401_v2  ;;  %v468_v62 = vshrl.u32 %v448_v48, 16  ;;  %v469_v1 = vand.u32 255, %v467_v53 }
 0x230   :  { %v504_v12 = vxor.u32 %v502_v59, %v500_v10  ;;  %vm1103_vm9 = vcmp.lt.u32.totalorder %v753_v61, 3  ;;  %vm527_vm2 = vcmp.lt.u32.totalorder %v525_v30, 3 }
 0x231   :  { %v405_v9 = vsel %vm51_vm0, %v403_v4, -inf  ;;  %v1083_v11 = vmul.f32 %v812_v7, %v400_v3  ;;  %v450_v4 = vand.u32 255, %v448_v48  ;;  %v470_v16 = vand.u32 255, %v468_v62 }
 0x232   :  { %406 = vmax.xlane.f32.xlu0 %v405_v9  ;;  %v505_v9 = vand.u32 255, %v503_v56  ;;  %vm471_vm10 = vcmp.lt.u32.totalorder %v469_v1, 3  ;;  %v514_v26 = vshrl.u32 %v504_v12, 8  ;;  %v506_v35 = vand.u32 255, %v504_v12 }
 0x233   :  { %v404_v63 = vand.u32 2147483647, %v1083_v11  ;;  %vm452_vm11 = vcmp.lt.u32.totalorder %v450_v4, 3  ;;  %v473_v29 = vsel %vm471_vm10, 4, %v872_v27  ;;  %vm472_vm14 = vcmp.lt.u32.totalorder %v470_v16, 3 }
 0x234   :  { %vm1108_vm12 = vcmp.lt.u32.totalorder %v505_v9, 3  ;;  %v454_v31 = vsel %vm452_vm11, 1, %v872_v27  ;;  %v524_v45 = vshrl.u32 %v504_v12, 16  ;;  %v483_v38 = vsel %vm1103_vm9, 8, %v872_v27 }
 0x235   :  { %v408_v0 = vsel %vm51_vm0, %v404_v63, -inf  ;;  %v513_v63 = vshrl.u32 %v503_v56, 8  ;;  %v516_v33 = vand.u32 255, %v514_v26  ;;  %v509_v41 = vsel %vm1108_vm12, 16, %v872_v27 }
 0x236   :  { %409 = vmax.xlane.f32.xlu1 %v408_v0  ;;  %v460_v0 = vand.u32 255, %v458_v36  ;;  %v474_v42 = vsel %vm472_vm14, 4, %v872_v27  ;;  %vm508_vm3 = vcmp.lt.u32.totalorder %v506_v35, 3  ;;  %v756_v10 = vshrl.u32 %v504_v12, 24  ;;  %v757_v12 = vld [vmem:[%s1211_s3] ss:$0 sm:$0xff] }
 0x237   :  { %v515_v21 = vand.u32 255, %v513_v63  ;;  %vm518_vm5 = vcmp.lt.u32.totalorder %v516_v33, 3  ;;  %v529_v53 = vsel %vm527_vm2, 64, %v872_v27  ;;  %v539_v36 = vsel %vm537_vm4, 128, %v872_v27  ;;  %s873_s3 = smov [#allocation6]  }
 0x238   :  { %vm462_vm13 = vcmp.lt.u32.totalorder %v460_v0, 3  ;;  %v520_v57 = vsel %vm518_vm5, 32, %v872_v27  ;;  %vm538_vm7 = vcmp.lt.u32.totalorder %v756_v10, 3  ;;  %s714_s7 = sshll.u32 %s873_s3, 4  ;;  %s715_s7 = int_to_ptr.vmem [resolvable:$true] %s714_s7 }
 0x239   :  { %vm517_vm15 = vcmp.lt.u32.totalorder %v515_v21, 3  ;;  %v464_v14 = vsel %vm462_vm13, 2, %v872_v27  ;;  %v540_v1 = vsel %vm538_vm7, 128, %v872_v27  ;;  %v587_v21 = vxor.u32 2842855661, %v927_v23  ;;  %s843_s8 = scalar_lea.vmem %s715_s7, 256  ;;  %p848_p9 = scmp.lt.s32.totalorder %s715_s7, %s715_s7 }
 0x23a   :  { %v519_v48 = vsel %vm517_vm15, 32, %v872_v27  ;;  %p844_p8 = scmp.ne.s32.totalorder %s715_s7, %s843_s8  ;;  %p849_p10 = scmp.lt.s32.totalorder %s843_s8, %s843_s8 }
 0x23c   :  { %p850_p11 = por %p849_p10, %p848_p9 }
 0x23e   :  { %p851_p12 = pnand %p850_p11, %p844_p8 }
 0x2bf   :  { %v1091_v34 = vpop.xlane.xlu0 %406 }
 0x2c0   :  { %v411_v43 = vmax.f32 %v1091_v34, 1e-08 }
 0x2c2   :  { %813 = vrcp.f32 %v411_v43  ;;  %v413_v63 = vmul.f32 0.007874016, %v411_v43 }
 0x2c3   :  { %v1096_v49 = vpop.xlane.xlu1 %409 }
 0x2c4   :  { %v412_v39 = vmax.f32 %v1096_v49, 1e-08  ;;  %v589_v49 = vshrl.u32 %v587_v21, 16 }
 0x2c6   :  { %815 = vrcp.f32 %v412_v39  ;;  %v414_v13 = vmul.f32 0.007874016, %v412_v39  ;;  %v643_v39 = vxor.u32 794710872, %v927_v23  ;;  %v591_v26 = vxor.u32 %v589_v49, %v587_v21 }
 0x2c8   :  { %v593_v30 = vmul.u32 2146121005, %v591_v26 }
 0x2cc   :  { %v814_v46 = vpop.eup %813 }
 0x2cd   :  { %v416_v51 = vmul.f32 127.0, %v814_v46  ;;  %v526_v46 = vand.u32 255, %v524_v45  ;;  %v595_v45 = vshrl.u32 %v593_v30, 15 }
 0x2cf   :  { %v419_v54 = vmul.f32 %v416_v51, %v401_v2  ;;  %vm528_vm6 = vcmp.lt.u32.totalorder %v526_v46, 3 }
 0x2d0   :  { %v816_v55 = vpop.eup %815 }
 0x2d1   :  { %v747_v58 = vmax.f32 %v419_v54, -128.0  ;;  %v418_v60 = vmul.f32 127.0, %v816_v55  ;;  %v510_v54 = vsel %vm508_vm3, 16, %v872_v27 }
 0x2d3   :  { %v748_v3 = vmin.f32 %v747_v58, 127.0  ;;  %v420_v7 = vmul.f32 %v418_v60, %v1083_v11  ;;  %v463_v11 = vsel %vm461_vm8, 2, %v872_v27  ;;  %v530_v60 = vsel %vm528_vm6, 64, %v872_v27 }
 0x2d5   :  { %v782_v2 = vcvt.f32.s32 %v748_v3  ;;  %v750_v5 = vmax.f32 %v420_v7, -128.0 }
 0x2d7   :  { %v429_v17 = vand.u32 255, %v782_v2  ;;  %v751_v18 = vmin.f32 %v750_v5, 127.0 }
 0x2d9   :  { %v455_v22 = vxor.u32 %v453_v8, %v429_v17  ;;  %v785_v28 = vcvt.f32.s32 %v751_v18 }
 0x2db   :  { %v465_v32 = vxor.u32 %v463_v11, %v455_v22  ;;  %v430_v37 = vand.u32 255, %v785_v28  ;;  %v588_v22 = vxor.u32 2842855661, %v929_v24  ;;  %v645_v28 = vshrl.u32 %v643_v39, 16 }
 0x2dd   :  { %v475_v40 = vxor.u32 %v473_v29, %v465_v32  ;;  %v456_v6 = vxor.u32 %v454_v31, %v430_v37  ;;  %v590_v25 = vshrl.u32 %v588_v22, 16  ;;  %v644_v31 = vxor.u32 794710872, %v929_v24 }
 0x2de   :  { %v647_v32 = vxor.u32 %v645_v28, %v643_v39 }
 0x2df   :  { %v485_v44 = vxor.u32 %v483_v38, %v475_v40  ;;  %v466_v47 = vxor.u32 %v464_v14, %v456_v6  ;;  %v592_v29 = vxor.u32 %v590_v25, %v588_v22  ;;  %v646_v37 = vshrl.u32 %v644_v31, 16 }
 0x2e0   :  { %v649_v38 = vmul.u32 2146121005, %v647_v32  ;;  %v597_v14 = vxor.u32 %v595_v45, %v593_v30 }
 0x2e1   :  { %v511_v51 = vxor.u32 %v509_v41, %v485_v44  ;;  %v476_v20 = vxor.u32 %v474_v42, %v466_v47  ;;  %v594_v35 = vmul.u32 2146121005, %v592_v29  ;;  %v648_v40 = vxor.u32 %v646_v37, %v644_v31 }
 0x2e2   :  { %v651_v6 = vshrl.u32 %v649_v38, 15  ;;  %v599_v42 = vmul.u32 2221713035, %v597_v14 }
 0x2e3   :  { %v521_v55 = vxor.u32 %v519_v48, %v511_v51  ;;  %v486_v56 = vxor.u32 %v484_v50, %v476_v20  ;;  %v596_v52 = vshrl.u32 %v594_v35, 15  ;;  %v650_v44 = vmul.u32 2146121005, %v648_v40 }
 0x2e4   :  { %v653_v46 = vxor.u32 %v651_v6, %v649_v38  ;;  %v601_v50 = vshrl.u32 %v599_v42, 16 }
 0x2e5   :  { %v531_v58 = vxor.u32 %v529_v53, %v521_v55  ;;  %v512_v59 = vxor.u32 %v510_v54, %v486_v56  ;;  %v598_v41 = vxor.u32 %v596_v52, %v594_v35  ;;  %v652_v51 = vshrl.u32 %v650_v44, 15 }
 0x2e6   :  { %v655_v10 = vmul.u32 2221713035, %v653_v46  ;;  %v603_v53 = vxor.u32 %v601_v50, %v599_v42 }
 0x2e7   :  { %v541_v61 = vxor.u32 %v539_v36, %v531_v58  ;;  %v522_v62 = vxor.u32 %v520_v57, %v512_v59  ;;  %v600_v47 = vmul.u32 2221713035, %v598_v41  ;;  %v654_v54 = vxor.u32 %v652_v51, %v650_v44 }
 0x2e8   :  { %v657_v56 = vshrl.u32 %v655_v10, 16  ;;  %v613_v57 = vshrl.u32 %v603_v53, 8 }
 0x2e9   :  { %v543_v3 = vshll.u32 %v541_v61, 24  ;;  %v532_v4 = vxor.u32 %v530_v60, %v522_v62  ;;  %v602_v20 = vshrl.u32 %v600_v47, 16  ;;  %v656_v59 = vmul.u32 2221713035, %v654_v54 }
 0x2ea   :  { %v605_v60 = vand.u32 255, %v603_v53  ;;  %v623_v61 = vshrl.u32 %v603_v53, 16 }
 0x2eb   :  { %v545_v7 = vshra.s32 %v543_v3, 24  ;;  %v542_v9 = vxor.u32 %v540_v1, %v532_v4  ;;  %v604_v36 = vxor.u32 %v602_v20, %v600_v47  ;;  %v659_v3 = vxor.u32 %v657_v56, %v655_v10 }
 0x2ec   :  { %vm607_vm8 = vcmp.lt.u32.totalorder %v605_v60, 3 }
 0x2ed   :  { %v547_v0 = vcvt.s32.f32 %v545_v7  ;;  %v544_v2 = vshll.u32 %v542_v9, 24  ;;  %v614_v4 = vshrl.u32 %v604_v36, 8  ;;  %v615_v7 = vand.u32 255, %v613_v57 }
 0x2ee   :  { %v609_v21 = vsel %vm607_vm8, 1, %v872_v27  ;;  %v679_v49 = vshrl.u32 %v659_v3, 16  ;;  %v765_v31 = vshrl.u32 %v604_v36, 24  ;;  %v766_v42 = vshrl.u32 %v659_v3, 24 }
 0x2ef   :  { %v549_v5 = vmul.f32 %v547_v0, %v413_v63  ;;  %v546_v8 = vshra.s32 %v544_v2, 24  ;;  %v658_v63 = vshrl.u32 %v656_v59, 16  ;;  %v764_v2 = vshrl.u32 %v603_v53, 24 }
 0x2f0   :  { %vm617_vm9 = vcmp.lt.u32.totalorder %v615_v7, 3  ;;  %v681_v37 = vand.u32 255, %v679_v49  ;;  %vm638_vm2 = vcmp.lt.u32.totalorder %v765_v31, 3  ;;  %vm693_vm5 = vcmp.lt.u32.totalorder %v766_v42, 3 }
 0x2f1   :  { %v548_v15 = vcvt.s32.f32 %v546_v8  ;;  %v557_v16 = vadd.f32 %v757_v12, %v549_v5  ;;  %v625_v5 = vand.u32 255, %v623_v61  ;;  %vm1159_vm10 = vcmp.lt.u32.totalorder %v764_v2, 3 }
 0x2f2   :  { %v639_v41 = vsel %vm1159_vm10, 8, %v872_v27  ;;  %vm683_vm3 = vcmp.lt.u32.totalorder %v681_v37, 3  ;;  %v640_v56 = vsel %vm638_vm2, 8, %v872_v27 }
 0x2f3   :  { %v550_v17 = vmul.f32 %v548_v15, %v414_v13  ;;  %v559_v18 = vand.u32 2147483647, %v557_v16  ;;  %v606_v13 = vand.u32 255, %v604_v36  ;;  %vm627_vm11 = vcmp.lt.u32.totalorder %v625_v5, 3 }
 0x2f4   :  { %v629_v45 = vsel %vm627_vm11, 4, %v872_v27 }
 0x2f5   :  { %v561_v11 = vsel %vm51_vm0, %v559_v18, -inf  ;;  %v1139_v19 = vadd.f32 %v757_v12, %v550_v17  ;;  %v624_v12 = vshrl.u32 %v604_v36, 16  ;;  %v661_v17 = vand.u32 255, %v659_v3 }
 0x2f6   :  { %562 = vmax.xlane.f32.xlu0 %v561_v11  ;;  %v669_v18 = vshrl.u32 %v659_v3, 8  ;;  %v616_v11 = vand.u32 255, %v614_v4  ;;  %vm608_vm12 = vcmp.lt.u32.totalorder %v606_v13, 3 }
 0x2f7   :  { %v560_v34 = vand.u32 2147483647, %v1139_v19  ;;  %v626_v39 = vand.u32 255, %v624_v12  ;;  %vm1164_vm13 = vcmp.lt.u32.totalorder %v661_v17, 3  ;;  %v610_v38 = vsel %vm608_vm12, 1, %v872_v27 }
 0x2f8   :  { %v671_v29 = vand.u32 255, %v669_v18  ;;  %vm618_vm14 = vcmp.lt.u32.totalorder %v616_v11, 3  ;;  %v665_v51 = vsel %vm1164_vm13, 16, %v872_v27 }
 0x2f9   :  { %v564_v43 = vsel %vm51_vm0, %v560_v34, -inf  ;;  %v660_v34 = vxor.u32 %v658_v63, %v656_v59  ;;  %vm628_vm15 = vcmp.lt.u32.totalorder %v626_v39, 3  ;;  %v620_v44 = vsel %vm618_vm14, 2, %v872_v27 }
 0x2fa   :  { %565 = vmax.xlane.f32.xlu1 %v564_v43  ;;  %vm673_vm1 = vcmp.lt.u32.totalorder %v671_v29, 3  ;;  %v630_v10 = vsel %vm628_vm15, 4, %v872_v27  ;;  %v685_v59 = vsel %vm683_vm3, 64, %v872_v27 }
 0x2fb   :  { %v670_v32 = vshrl.u32 %v660_v34, 8  ;;  %v662_v14 = vand.u32 255, %v660_v34  ;;  %v680_v40 = vshrl.u32 %v660_v34, 16  ;;  %v767_v57 = vshrl.u32 %v660_v34, 24 }
 0x2fd   :  { %v672_v47 = vand.u32 255, %v670_v32  ;;  %vm664_vm4 = vcmp.lt.u32.totalorder %v662_v14, 3  ;;  %v682_v53 = vand.u32 255, %v680_v40  ;;  %vm694_vm8 = vcmp.lt.u32.totalorder %v767_v57, 3 }
 0x2fe   :  { %v666_v60 = vsel %vm664_vm4, 16, %v872_v27  ;;  %v696_v2 = vsel %vm694_vm8, 128, %v872_v27 }
 0x2ff   :  { %vm674_vm6 = vcmp.lt.u32.totalorder %v672_v47, 3  ;;  %vm684_vm7 = vcmp.lt.u32.totalorder %v682_v53, 3 }
 0x300   :  { %v676_v3 = vsel %vm674_vm6, 32, %v872_v27 }
 0x383   :  { %v1147_v33 = vpop.xlane.xlu0 %562 }
 0x384   :  { %v567_v23 = vmax.f32 %v1147_v33, 1e-08 }
 0x386   :  { %817 = vrcp.f32 %v567_v23 }
 0x387   :  { %v1152_v24 = vpop.xlane.xlu1 %565 }
 0x388   :  { %v568_v48 = vmax.f32 %v1152_v24, 1e-08 }
 0x38a   :  { %819 = vrcp.f32 %v568_v48  ;;  %v570_v34 = vmul.f32 0.007874016, %v568_v48 }
 0x390   :  { %v818_v55 = vpop.eup %817 }
 0x391   :  { %v572_v58 = vmul.f32 127.0, %v818_v55  ;;  %v675_v55 = vsel %vm673_vm1, 32, %v872_v27 }
 0x393   :  { %v575_v62 = vmul.f32 %v572_v58, %v557_v16 }
 0x394   :  { %v820_v1 = vpop.eup %819 }
 0x395   :  { %v758_v9 = vmax.f32 %v575_v62, -128.0  ;;  %v574_v0 = vmul.f32 127.0, %v820_v1  ;;  %v695_v1 = vsel %vm693_vm5, 128, %v872_v27 }
 0x397   :  { %v759_v8 = vmin.f32 %v758_v9, 127.0  ;;  %v576_v15 = vmul.f32 %v574_v0, %v1139_v19  ;;  %v619_v19 = vsel %vm617_vm9, 2, %v872_v27  ;;  %v686_v9 = vsel %vm684_vm7, 64, %v872_v27 }
 0x399   :  { %v788_v16 = vcvt.f32.s32 %v759_v8  ;;  %v761_v43 = vmax.f32 %v576_v15, -128.0  ;;  %v569_v15 = vmul.f32 0.007874016, %v567_v23 }
 0x39b   :  { %v585_v25 = vand.u32 255, %v788_v16  ;;  %v762_v26 = vmin.f32 %v761_v43, 127.0 }
 0x39d   :  { %v611_v30 = vxor.u32 %v609_v21, %v585_v25  ;;  %v791_v35 = vcvt.f32.s32 %v762_v26 }
 0x39f   :  { %v621_v52 = vxor.u32 %v619_v19, %v611_v30  ;;  %v586_v6 = vand.u32 255, %v791_v35 }
 0x3a1   :  { %v631_v46 = vxor.u32 %v629_v45, %v621_v52  ;;  %v612_v50 = vxor.u32 %v610_v38, %v586_v6 }
 0x3a3   :  { %v641_v20 = vxor.u32 %v639_v41, %v631_v46  ;;  %v622_v54 = vxor.u32 %v620_v44, %v612_v50 }
 0x3a5   :  { %v667_v36 = vxor.u32 %v665_v51, %v641_v20  ;;  %v632_v58 = vxor.u32 %v630_v10, %v622_v54 }
 0x3a7   :  { %v677_v61 = vxor.u32 %v675_v55, %v667_v36  ;;  %v642_v62 = vxor.u32 %v640_v56, %v632_v58 }
 0x3a9   :  { %v687_v4 = vxor.u32 %v685_v59, %v677_v61  ;;  %v668_v7 = vxor.u32 %v666_v60, %v642_v62 }
 0x3ab   :  { %v697_v63 = vxor.u32 %v695_v1, %v687_v4  ;;  %v678_v0 = vxor.u32 %v676_v3, %v668_v7 }
 0x3ad   :  { %v699_v12 = vshll.u32 %v697_v63, 24  ;;  %v688_v5 = vxor.u32 %v686_v9, %v678_v0 }
 0x3af   :  { %v701_v8 = vshra.s32 %v699_v12, 24  ;;  %v698_v13 = vxor.u32 %v696_v2, %v688_v5 }
 0x3b1   :  { %v703_v17 = vcvt.s32.f32 %v701_v8  ;;  %v700_v18 = vshll.u32 %v698_v13, 24 }
 0x3b3   :  { %v705_v11 = vmul.f32 %v703_v17, %v569_v15  ;;  %v702_v16 = vshra.s32 %v700_v18, 24 }
 0x3b5   :  { %707 = vst.msk [vmem:[#allocation6] sm:$0xff] %vm51_vm0, %v705_v11  ;;  %v704_v43 = vcvt.s32.f32 %v702_v16 }
 0x3b7   :  { %v706_v27 = vmul.f32 %v704_v43, %v570_v34 }
 0x3b9   :  { %708 = vst.msk [vmem:[#allocation6 + $0x8] sm:$0xff] %vm51_vm0, %v706_v27 }
 0x3ba   :  { %854 = shalt.err (!%p851_p12)
}
 0x3bb   :  { %s855_s11 = scalar_lea.hbm %s1212_s4, 256 }
 0x3bc   :  { %p856_p13 = scmp.ne.s32.totalorder %s1212_s4, %s855_s11  ;;  %p859_p0 = scmp.lt.u32.totalorder %s855_s11, %s1212_s4 }
 0x3be   :  { %p861_p1 = pnand %p859_p0, %p856_p13 }
 0x3c0   :  { %864 = shalt.err (!%p861_p1)
}
 0x3c1   :  { %720 = dma.vmem_to_hbm [thread:$0]  %s715_s7, 256, %s1212_s4, [#allocation5], %s870_s25, %s870_s25, %s871_s26  }
 0x3c2   :  { %867 = dma.done.wait [#allocation5], 256  }
 0x3c3   :  { %868 = vsyncadd [#allocation5], 4294967040 }
 0x3c4   :  { %724 = vsyncpa [#allocation4], 1 }
 0x3c5   :  { %725 = vsyncpa [#allocation5], 1 }

</bundles_post_ra>
